<compile_context>
chip_gen: v5e
topology: v5e:2x2
jax: 0.10.0
libtpu: 0.0.40
codegen_flags: <defaults>
</compile_context>

<pallas_src>
import functools

import jax
import jax.numpy as jnp
from jax import lax
from jax.experimental import pallas as pl
from jax.experimental.pallas import tpu as pltpu


LANES = 128          # keep output-channel dim lane-dense (multiple of 128)
SUBLANE_BF16 = 16    # bf16 packs 16 rows per sublane group
_BN_EPS = 1e-5


def _round_up(x, m):
    return ((x + m - 1) // m) * m


@functools.lru_cache(maxsize=1)
def _vmem_limit_bytes():
    """Generation-aware VMEM allowance: ~0.75x physical, clamped to [32, 96] MiB.
    Fallback 48 MiB fits every generation (incl. v7x's 64 MiB per TensorCore)."""
    try:
        cap = int(0.75 * pltpu.get_tpu_info().vmem_capacity_bytes)
    except Exception:  # conservative fallback if the query is unavailable
        cap = 48 * 1024 * 1024
    return max(32 * 1024 * 1024, min(cap, 96 * 1024 * 1024))


# -----------------------------------------------------------------------------
# Kernel 1: fused (patches @ W_folded) + bias (+ ReLU)   -- stride-2 blocks
# -----------------------------------------------------------------------------
def _matmul_bias_act_kernel(x_ref, w_ref, b_ref, o_ref, *, apply_relu):
    # x_ref: (tm, K)     bf16 patch tile (streamed)
    # w_ref: (K, Npad)   bf16 BN-folded weights (resident, constant index map)
    # b_ref: (1, Npad)   f32 folded bias (resident)
    # o_ref: (tm, Npad)  lane-dense output tile (bf16 or f32)
    y = jnp.dot(x_ref[...], w_ref[...], preferred_element_type=jnp.float32)
    y = y + b_ref[...]
    if apply_relu:
        y = jnp.maximum(y, 0.0)
    o_ref[...] = y.astype(o_ref.dtype)


def matmul_bias_act(patches, w_mat, bias, *, apply_relu, out_dtype, tm_target=512):
    """patches (M, K) bf16 @ w_mat (K, Npad) bf16 + bias -> (M, Npad) out_dtype."""
    M, K = patches.shape
    n_pad = w_mat.shape[1]
    assert n_pad % LANES == 0

    # Largest row tile that fits comfortably; no forced splitting on 1-TC chips.
    # TODO(synk): on v7x (2 TCs) split so the parallel axis has >=4 grid steps.
    tm = min(tm_target, _round_up(M, SUBLANE_BF16))
    grid_m = pl.cdiv(M, tm)          # ragged last tile is masked by Pallas

    kernel = functools.partial(_matmul_bias_act_kernel, apply_relu=apply_relu)
    return pl.pallas_call(
        kernel,
        out_shape=jax.ShapeDtypeStruct((M, n_pad), out_dtype),
        grid_spec=pl.GridSpec(
            grid=(grid_m,),
            in_specs=[
                pl.BlockSpec((tm, K), lambda i: (i, 0)),
                pl.BlockSpec((K, n_pad), lambda i: (0, 0)),    # resident
                pl.BlockSpec((1, n_pad), lambda i: (0, 0)),    # resident
            ],
            out_specs=pl.BlockSpec((tm, n_pad), lambda i: (i, 0)),
        ),
        compiler_params=pltpu.CompilerParams(
            dimension_semantics=("parallel",),
            vmem_limit_bytes=_vmem_limit_bytes(),
        ),
    )(patches, w_mat, bias)


# -----------------------------------------------------------------------------
# Kernel 2: fully fused 3x3 / stride-1 / pad-1 conv (no im2col blob in HBM)
# -----------------------------------------------------------------------------
def _conv3x3_s1_kernel(x_ref, w_ref, b_ref, o_ref, *, w_padded, q_rows, apply_relu):
    # x_ref: (S, C)        bf16 flattened zero-padded image (one batch element)
    # w_ref: (9, C, Cout)  bf16 BN-folded tap weights (resident)
    # b_ref: (1, Cout)     f32 folded bias (resident)
    # o_ref: (q_rows, Cout) output rows over the padded-width grid
    cout = o_ref.shape[-1]
    acc = jnp.zeros((q_rows, cout), jnp.float32)
    for t in range(9):                       # static tap loop, 9 MXU matmuls
        i, j = divmod(t, 3)
        ofs = i * w_padded + j               # static row offset of tap (i, j)
        a = x_ref[ofs:ofs + q_rows, :]       # shifted flat window (VMEM view)
        acc = acc + jnp.dot(a, w_ref[t], preferred_element_type=jnp.float32)
    y = acc + b_ref[...]
    if apply_relu:
        y = jnp.maximum(y, 0.0)
    o_ref[...] = y.astype(o_ref.dtype)


def conv3x3_s1_fused(x_nhwc, w_taps, bias, *, apply_relu, out_dtype):
    """Fused stride-1 conv: per-image flat slab in VMEM, 9 in-kernel taps."""
    n, h, w, c = x_nhwc.shape
    cout = w_taps.shape[-1]
    w_padded = w + 2
    # One pad builds both the conv halo and one extra bottom row so that every
    # shifted flat window stays in-bounds ((H+3)*(W+2) >= (H+2)*(W+2) + 2).
    xp = jnp.pad(x_nhwc, ((0, 0), (1, 2), (1, 1), (0, 0)))
    s_rows = (h + 3) * w_padded
    x_flat = xp.reshape(n, s_rows, c)
    q_rows = h * w_padded                    # 2 junk columns per image row

    kernel = functools.partial(
        _conv3x3_s1_kernel, w_padded=w_padded, q_rows=q_rows, apply_relu=apply_relu)
    out = pl.pallas_call(
        kernel,
        out_shape=jax.ShapeDtypeStruct((n, q_rows, cout), out_dtype),
        grid_spec=pl.GridSpec(
            grid=(n,),
            in_specs=[
                pl.BlockSpec((None, s_rows, c), lambda b: (b, 0, 0)),
                pl.BlockSpec((9, c, cout), lambda b: (0, 0, 0)),   # resident
                pl.BlockSpec((1, cout), lambda b: (0, 0)),         # resident
            ],
            out_specs=pl.BlockSpec((None, q_rows, cout), lambda b: (b, 0, 0)),
        ),
        compiler_params=pltpu.CompilerParams(
            dimension_semantics=("parallel",),
            vmem_limit_bytes=_vmem_limit_bytes(),
        ),
    )(x_flat, w_taps, bias)
    # (n, h*(w+2), cout) -> (n, h, w+2, cout); columns [0, w) are valid.
    return out.reshape(n, h, w_padded, cout)[:, :, :w, :]


def _fused_fits_vmem(h, w, c, cout):
    s_rows = (h + 3) * (w + 2)
    q_rows = h * (w + 2)
    need = (2 * s_rows * c * 2          # x slab (double-buffered), bf16
            + 2 * 9 * c * cout * 2      # tap weights (double-buffered), bf16
            + 2 * q_rows * cout * 4     # output block (double-buffered), f32
            + q_rows * cout * 4)        # f32 accumulator
    return need < 0.5 * _vmem_limit_bytes()


# -----------------------------------------------------------------------------
# im2col glue (plain JAX, bf16) for the stride-2 blocks
# -----------------------------------------------------------------------------
def im2col_3x3(x_nhwc, stride):
    """(N,H,W,C) -> patches (N*OH*OW, 9*C); tap order (kh, kw, c)."""
    n, h, w, c = x_nhwc.shape
    pad, kh, kw = 1, 3, 3
    oh = (h + 2 * pad - kh) // stride + 1
    ow = (w + 2 * pad - kw) // stride + 1
    xp = jnp.pad(x_nhwc, ((0, 0), (pad, pad), (pad, pad), (0, 0)))
    cols = []
    for i in range(kh):
        for j in range(kw):
            cols.append(lax.slice(
                xp, (0, i, j, 0),
                (n, i + stride * (oh - 1) + 1, j + stride * (ow - 1) + 1, c),
                (1, stride, stride, 1)))
    patches = jnp.concatenate(cols, axis=-1)          # (n, oh, ow, 9*c)
    return patches.reshape(n * oh * ow, kh * kw * c), (n, oh, ow)


# -----------------------------------------------------------------------------
# Conv + BN(eval) [+ ReLU] block
# -----------------------------------------------------------------------------
def _fold_bn(params, in_c_act, out_c_pad):
    """Fold eval-mode BN into conv weights/bias; zero-pad input channels to the
    activation's (lane-padded) width and output channels to a 128 multiple."""
    w = params["w"]                                    # (OutC, InC, 3, 3)
    out_c, in_c = w.shape[0], w.shape[1]
    scale = params["gamma"] / jnp.sqrt(params["var"] + _BN_EPS)
    bias = (params["b"] - params["mean"]) * scale + params["beta"]
    w_hwio = jnp.transpose(w, (2, 3, 1, 0)) * scale    # (3, 3, InC, OutC)
    w_hwio = jnp.pad(w_hwio, ((0, 0), (0, 0),
                              (0, in_c_act - in_c), (0, out_c_pad - out_c)))
    return (w_hwio.astype(jnp.bfloat16),
            jnp.pad(bias, (0, out_c_pad - out_c)).reshape(1, out_c_pad).astype(jnp.float32))


def conv_bn_act(x_nhwc, params, stride, apply_relu, out_dtype):
    """One Conv2d(3x3, pad=1) + BatchNorm2d(eval) [+ ReLU] block.
    Activations keep a lane-padded channel dim (multiple of 128) throughout."""
    out_c, in_c = params["w"].shape[0], params["w"].shape[1]
    c_act = x_nhwc.shape[-1]
    assert c_act >= in_c
    out_c_pad = _round_up(out_c, LANES)
    # TODO(synk): align out_c_pad to 256 on v6e/v7x (2x256x256 MXU) for real PVIG widths.
    w_hwio, bias = _fold_bn(params, c_act, out_c_pad)
    x_bf16 = x_nhwc.astype(jnp.bfloat16)

    if stride == 1 and _fused_fits_vmem(x_nhwc.shape[1], x_nhwc.shape[2], c_act, out_c_pad):
        w_taps = w_hwio.reshape(9, c_act, out_c_pad)
        return conv3x3_s1_fused(x_bf16, w_taps, bias,
                                apply_relu=apply_relu, out_dtype=out_dtype)

    # Stride-2 (or VMEM-overflow) path: bf16 im2col + fused matmul kernel.
    # TODO(synk): fuse the stride-2 taps in-kernel too (even/odd row pre-split).
    w_mat = w_hwio.reshape(9 * c_act, out_c_pad)
    patches, (n, oh, ow) = im2col_3x3(x_bf16, stride)
    y = matmul_bias_act(patches, w_mat, bias, apply_relu=apply_relu, out_dtype=out_dtype)
    return y.reshape(n, oh, ow, out_c_pad)


# -----------------------------------------------------------------------------
# Parameter init (deterministic, synthetic)
# -----------------------------------------------------------------------------
def init_conv_bn(key, in_c, out_c):
    k1, k2, k3, k4, k5, k6 = jax.random.split(key, 6)
    return {
        "w": 0.1 * jax.random.normal(k1, (out_c, in_c, 3, 3), jnp.float32),
        "b": 0.1 * jax.random.normal(k2, (out_c,), jnp.float32),
        "gamma": 1.0 + 0.1 * jax.random.normal(k3, (out_c,), jnp.float32),
        "beta": 0.1 * jax.random.normal(k4, (out_c,), jnp.float32),
        "mean": 0.1 * jax.random.normal(k5, (out_c,), jnp.float32),
        "var": jnp.abs(1.0 + 0.1 * jax.random.normal(k6, (out_c,), jnp.float32)),
    }


def init_stem_params(key, in_dim, out_dim):
    k1, k2, k3 = jax.random.split(key, 3)
    return {
        "block1": init_conv_bn(k1, in_dim, out_dim // 2),
        "block2": init_conv_bn(k2, out_dim // 2, out_dim),
        "block3": init_conv_bn(k3, out_dim, out_dim),
    }


# -----------------------------------------------------------------------------
# Stem forward: NCHW in -> NCHW out
# -----------------------------------------------------------------------------
def stem_forward(x_nchw, params):
    out_dim = params["block3"]["w"].shape[0]
    x = jnp.transpose(x_nchw, (0, 2, 3, 1))                              # NHWC
    x = conv_bn_act(x, params["block1"], 2, True, jnp.bfloat16)          # H/2, bf16
    x = conv_bn_act(x, params["block2"], 2, True, jnp.bfloat16)          # H/4, bf16
    x = conv_bn_act(x, params["block3"], 1, False, jnp.float32)          # H/4, f32
    x = x[..., :out_dim]                    # drop lane padding once, at the end
    return jnp.transpose(x, (0, 3, 1, 2))                                # NCHW


# -----------------------------------------------------------------------------
# Pure-JAX references.
#   quantize=True  -> emulates the kernel's bf16 activation/weight rounding
#                     with fp32 accumulation (tight comparison).
#   quantize=False -> full fp32 semantics of the original module (loose check).
# -----------------------------------------------------------------------------
def ref_conv_bn_act(x_nhwc, params, stride, apply_relu, quantize):
    scale = params["gamma"] / jnp.sqrt(params["var"] + _BN_EPS)
    w = jnp.transpose(params["w"], (2, 3, 1, 0)) * scale          # HWIO, folded
    bias = (params["b"] - params["mean"]) * scale + params["beta"]
    if quantize:
        w = w.astype(jnp.bfloat16).astype(jnp.float32)
        x_nhwc = x_nhwc.astype(jnp.bfloat16).astype(jnp.float32)
    y = lax.conv_general_dilated(
        x_nhwc, w, (stride, stride), ((1, 1), (1, 1)),
        dimension_numbers=("NHWC", "HWIO", "NHWC"),
    ) + bias
    if apply_relu:
        y = jnp.maximum(y, 0.0)
    return y


def ref_stem_forward(x_nchw, params, quantize):
    x = jnp.transpose(x_nchw, (0, 2, 3, 1))
    x = ref_conv_bn_act(x, params["block1"], 2, True, quantize)
    x = ref_conv_bn_act(x, params["block2"], 2, True, quantize)
    x = ref_conv_bn_act(x, params["block3"], 1, False, quantize)
    return jnp.transpose(x, (0, 3, 1, 2))


if __name__ == "__main__":
    key = jax.random.PRNGKey(0)
    k_in, k_par = jax.random.split(key)

    # Small shapes consistent with the module: batch=2, in_dim=4, 16x16 image,
    # out_dim=32 (so out_dim//2 = 16).
    batch, in_dim, img, out_dim = 2, 4, 16, 32
    x = jax.random.normal(k_in, (batch, in_dim, img, img), jnp.float32)
    params = init_stem_params(k_par, in_dim, out_dim)

    stem = jax.jit(stem_forward)
    out = jax.block_until_ready(stem(x, params))
    assert out.shape == (batch, out_dim, img // 4, img // 4), out.shape
    assert out.dtype == jnp.float32, out.dtype

    # Tight check: reference with the same bf16 operand rounding as the kernel.
    ref_q = jax.block_until_ready(ref_stem_forward(x, params, quantize=True))
    err_q = float(jnp.max(jnp.abs(out - ref_q)))
    assert jnp.allclose(out, ref_q, atol=2e-2, rtol=2e-2), err_q

    # Loose sanity check vs. the full-precision (fp32) module semantics.
    ref_f = jax.block_until_ready(ref_stem_forward(x, params, quantize=False))
    err_f = float(jnp.max(jnp.abs(out - ref_f)))
    assert jnp.allclose(out, ref_f, atol=1.5e-1, rtol=1.5e-1), err_f

    print("KERNEL_OK")
</pallas_src>

<mosaic_0001>
module attributes {stable_mosaic.version = 11 : i64} {
  func.func @_matmul_bias_act_kernel(%arg0: i32, %arg1: memref<128x36xbf16, #tpu.memory_space<vmem>>, %arg2: memref<36x128xbf16, #tpu.memory_space<vmem>>, %arg3: memref<1x128xf32, #tpu.memory_space<vmem>>, %arg4: memref<128x128xbf16, #tpu.memory_space<vmem>>) attributes {dimension_semantics = [#tpu.dimension_semantics<parallel>], iteration_bounds = array<i64: 1>, scalar_prefetch = 0 : i64, scratch_operands = 0 : i64, tpu.core_type = #tpu.core_type<tc>, window_params = [{transform_indices = @transform_0, window_bounds = array<i64: 128, 36>}, {pipeline_mode = #tpu.pipeline_mode<synchronous>, transform_indices = @transform_1, window_bounds = array<i64: 36, 128>}, {pipeline_mode = #tpu.pipeline_mode<synchronous>, transform_indices = @transform_2, window_bounds = array<i64: 1, 128>}, {transform_indices = @transform_3, window_bounds = array<i64: 128, 128>}]} {
    %c0 = arith.constant 0 : index
    %c0_0 = arith.constant 0 : index
    %0 = vector.load %arg1[%c0, %c0_0] : memref<128x36xbf16, #tpu.memory_space<vmem>>, vector<128x36xbf16>
    %c0_1 = arith.constant 0 : index
    %c0_2 = arith.constant 0 : index
    %1 = vector.load %arg2[%c0_1, %c0_2] : memref<36x128xbf16, #tpu.memory_space<vmem>>, vector<36x128xbf16>
    %cst = arith.constant dense<0.000000e+00> : vector<128x128xf32>
    %2 = tpu.matmul %0, %1, %cst {dimension_numbers = #tpu.dot_dimension_numbers<[1], [0], [0], [1], [0, 0, 1, 1], [], []>} : vector<128x36xbf16>, vector<36x128xbf16>, vector<128x128xf32> -> vector<128x128xf32>
    %c0_3 = arith.constant 0 : index
    %c0_4 = arith.constant 0 : index
    %3 = vector.load %arg3[%c0_3, %c0_4] : memref<1x128xf32, #tpu.memory_space<vmem>>, vector<1x128xf32>
    %4 = vector.broadcast %3 : vector<1x128xf32> to vector<128x128xf32>
    %5 = arith.addf %2, %4 : vector<128x128xf32>
    %cst_5 = arith.constant 0.000000e+00 : f32
    %6 = vector.broadcast %cst_5 : f32 to vector<128x128xf32>
    %7 = arith.maximumf %5, %6 : vector<128x128xf32>
    %8 = arith.truncf %7 : vector<128x128xf32> to vector<128x128xbf16>
    %c0_6 = arith.constant 0 : index
    %c0_7 = arith.constant 0 : index
    %9 = vector.load %arg4[%c0_6, %c0_7] : memref<128x128xbf16, #tpu.memory_space<vmem>>, vector<128x128xbf16>
    tpu.vector_store %arg4[%c0_6, %c0_7], %8 {strides = array<i32>} : memref<128x128xbf16, #tpu.memory_space<vmem>>, vector<128x128xbf16>,
    return
  }
  func.func @transform_0(%arg0: i32) -> (i32, i32) {
    %c0_i32 = arith.constant 0 : i32
    %c0_i32_0 = arith.constant 0 : i32
    return %arg0, %c0_i32 : i32, i32
  }
  func.func @transform_1(%arg0: i32) -> (i32, i32) {
    %c0_i32 = arith.constant 0 : i32
    %c0_i32_0 = arith.constant 0 : i32
    %c0_i32_1 = arith.constant 0 : i32
    return %c0_i32, %c0_i32_0 : i32, i32
  }
  func.func @transform_2(%arg0: i32) -> (i32, i32) {
    %c0_i32 = arith.constant 0 : i32
    %c0_i32_0 = arith.constant 0 : i32
    %c0_i32_1 = arith.constant 0 : i32
    return %c0_i32, %c0_i32_0 : i32, i32
  }
  func.func @transform_3(%arg0: i32) -> (i32, i32) {
    %c0_i32 = arith.constant 0 : i32
    %c0_i32_0 = arith.constant 0 : i32
    return %arg0, %c0_i32 : i32, i32
  }
}

module attributes {stable_mosaic.version = 11 : i64} {
  func.func @_matmul_bias_act_kernel(%arg0: i32, %arg1: memref<32x1152xbf16, #tpu.memory_space<vmem>>, %arg2: memref<1152x128xbf16, #tpu.memory_space<vmem>>, %arg3: memref<1x128xf32, #tpu.memory_space<vmem>>, %arg4: memref<32x128xbf16, #tpu.memory_space<vmem>>) attributes {dimension_semantics = [#tpu.dimension_semantics<parallel>], iteration_bounds = array<i64: 1>, scalar_prefetch = 0 : i64, scratch_operands = 0 : i64, tpu.core_type = #tpu.core_type<tc>, window_params = [{transform_indices = @transform_0, window_bounds = array<i64: 32, 1152>}, {pipeline_mode = #tpu.pipeline_mode<synchronous>, transform_indices = @transform_1, window_bounds = array<i64: 1152, 128>}, {pipeline_mode = #tpu.pipeline_mode<synchronous>, transform_indices = @transform_2, window_bounds = array<i64: 1, 128>}, {transform_indices = @transform_3, window_bounds = array<i64: 32, 128>}]} {
    %c0 = arith.constant 0 : index
    %c0_0 = arith.constant 0 : index
    %0 = vector.load %arg1[%c0, %c0_0] : memref<32x1152xbf16, #tpu.memory_space<vmem>>, vector<32x1152xbf16>
    %c0_1 = arith.constant 0 : index
    %c0_2 = arith.constant 0 : index
    %1 = vector.load %arg2[%c0_1, %c0_2] : memref<1152x128xbf16, #tpu.memory_space<vmem>>, vector<1152x128xbf16>
    %cst = arith.constant dense<0.000000e+00> : vector<32x128xf32>
    %2 = tpu.matmul %0, %1, %cst {dimension_numbers = #tpu.dot_dimension_numbers<[1], [0], [0], [1], [0, 0, 1, 1], [], []>} : vector<32x1152xbf16>, vector<1152x128xbf16>, vector<32x128xf32> -> vector<32x128xf32>
    %c0_3 = arith.constant 0 : index
    %c0_4 = arith.constant 0 : index
    %3 = vector.load %arg3[%c0_3, %c0_4] : memref<1x128xf32, #tpu.memory_space<vmem>>, vector<1x128xf32>
    %4 = vector.broadcast %3 : vector<1x128xf32> to vector<32x128xf32>
    %5 = arith.addf %2, %4 : vector<32x128xf32>
    %cst_5 = arith.constant 0.000000e+00 : f32
    %6 = vector.broadcast %cst_5 : f32 to vector<32x128xf32>
    %7 = arith.maximumf %5, %6 : vector<32x128xf32>
    %8 = arith.truncf %7 : vector<32x128xf32> to vector<32x128xbf16>
    %c0_6 = arith.constant 0 : index
    %c0_7 = arith.constant 0 : index
    %9 = vector.load %arg4[%c0_6, %c0_7] : memref<32x128xbf16, #tpu.memory_space<vmem>>, vector<32x128xbf16>
    tpu.vector_store %arg4[%c0_6, %c0_7], %8 {strides = array<i32>} : memref<32x128xbf16, #tpu.memory_space<vmem>>, vector<32x128xbf16>,
    return
  }
  func.func @transform_0(%arg0: i32) -> (i32, i32) {
    %c0_i32 = arith.constant 0 : i32
    %c0_i32_0 = arith.constant 0 : i32
    return %arg0, %c0_i32 : i32, i32
  }
  func.func @transform_1(%arg0: i32) -> (i32, i32) {
    %c0_i32 = arith.constant 0 : i32
    %c0_i32_0 = arith.constant 0 : i32
    %c0_i32_1 = arith.constant 0 : i32
    return %c0_i32, %c0_i32_0 : i32, i32
  }
  func.func @transform_2(%arg0: i32) -> (i32, i32) {
    %c0_i32 = arith.constant 0 : i32
    %c0_i32_0 = arith.constant 0 : i32
    %c0_i32_1 = arith.constant 0 : i32
    return %c0_i32, %c0_i32_0 : i32, i32
  }
  func.func @transform_3(%arg0: i32) -> (i32, i32) {
    %c0_i32 = arith.constant 0 : i32
    %c0_i32_0 = arith.constant 0 : i32
    return %arg0, %c0_i32 : i32, i32
  }
}

module attributes {stable_mosaic.version = 11 : i64} {
  func.func @_conv3x3_s1_kernel(%arg0: i32, %arg1: memref<1x42x128xbf16, #tpu.memory_space<vmem>>, %arg2: memref<9x128x128xbf16, #tpu.memory_space<vmem>>, %arg3: memref<1x128xf32, #tpu.memory_space<vmem>>, %arg4: memref<1x24x128xf32, #tpu.memory_space<vmem>>) attributes {dimension_semantics = [#tpu.dimension_semantics<parallel>], iteration_bounds = array<i64: 2>, scalar_prefetch = 0 : i64, scratch_operands = 0 : i64, tpu.core_type = #tpu.core_type<tc>, window_params = [{transform_indices = @transform_0, window_bounds = array<i64: 1, 42, 128>}, {pipeline_mode = #tpu.pipeline_mode<synchronous>, transform_indices = @transform_1, window_bounds = array<i64: 9, 128, 128>}, {pipeline_mode = #tpu.pipeline_mode<synchronous>, transform_indices = @transform_2, window_bounds = array<i64: 1, 128>}, {transform_indices = @transform_3, window_bounds = array<i64: 1, 24, 128>}]} {
    %cst = arith.constant 0.000000e+00 : f32
    %0 = vector.broadcast %cst : f32 to vector<24x128xf32>
    %c0 = arith.constant 0 : index
    %c0_0 = arith.constant 0 : index
    %c0_1 = arith.constant 0 : index
    %1 = vector.load %arg1[%c0, %c0_0, %c0_1] : memref<1x42x128xbf16, #tpu.memory_space<vmem>>, vector<1x24x128xbf16>
    %2 = vector.shape_cast %1 : vector<1x24x128xbf16> to vector<24x128xbf16>
    %c0_2 = arith.constant 0 : index
    %c0_3 = arith.constant 0 : index
    %c0_4 = arith.constant 0 : index
    %3 = vector.load %arg2[%c0_2, %c0_3, %c0_4] : memref<9x128x128xbf16, #tpu.memory_space<vmem>>, vector<1x128x128xbf16>
    %4 = vector.shape_cast %3 : vector<1x128x128xbf16> to vector<128x128xbf16>
    %cst_5 = arith.constant dense<0.000000e+00> : vector<24x128xf32>
    %5 = tpu.matmul %2, %4, %cst_5 {dimension_numbers = #tpu.dot_dimension_numbers<[1], [0], [0], [1], [0, 0, 1, 1], [], []>} : vector<24x128xbf16>, vector<128x128xbf16>, vector<24x128xf32> -> vector<24x128xf32>
    %6 = arith.addf %0, %5 : vector<24x128xf32>
    %c0_6 = arith.constant 0 : index
    %c1 = arith.constant 1 : index
    %c0_7 = arith.constant 0 : index
    %7 = vector.load %arg1[%c0_6, %c1, %c0_7] : memref<1x42x128xbf16, #tpu.memory_space<vmem>>, vector<1x24x128xbf16>
    %8 = vector.shape_cast %7 : vector<1x24x128xbf16> to vector<24x128xbf16>
    %c1_8 = arith.constant 1 : index
    %c0_9 = arith.constant 0 : index
    %c0_10 = arith.constant 0 : index
    %9 = vector.load %arg2[%c1_8, %c0_9, %c0_10] : memref<9x128x128xbf16, #tpu.memory_space<vmem>>, vector<1x128x128xbf16>
    %10 = vector.shape_cast %9 : vector<1x128x128xbf16> to vector<128x128xbf16>
    %cst_11 = arith.constant dense<0.000000e+00> : vector<24x128xf32>
    %11 = tpu.matmul %8, %10, %cst_11 {dimension_numbers = #tpu.dot_dimension_numbers<[1], [0], [0], [1], [0, 0, 1, 1], [], []>} : vector<24x128xbf16>, vector<128x128xbf16>, vector<24x128xf32> -> vector<24x128xf32>
    %12 = arith.addf %6, %11 : vector<24x128xf32>
    %c0_12 = arith.constant 0 : index
    %c2 = arith.constant 2 : index
    %c0_13 = arith.constant 0 : index
    %13 = vector.load %arg1[%c0_12, %c2, %c0_13] : memref<1x42x128xbf16, #tpu.memory_space<vmem>>, vector<1x24x128xbf16>
    %14 = vector.shape_cast %13 : vector<1x24x128xbf16> to vector<24x128xbf16>
    %c2_14 = arith.constant 2 : index
    %c0_15 = arith.constant 0 : index
    %c0_16 = arith.constant 0 : index
    %15 = vector.load %arg2[%c2_14, %c0_15, %c0_16] : memref<9x128x128xbf16, #tpu.memory_space<vmem>>, vector<1x128x128xbf16>
    %16 = vector.shape_cast %15 : vector<1x128x128xbf16> to vector<128x128xbf16>
    %cst_17 = arith.constant dense<0.000000e+00> : vector<24x128xf32>
    %17 = tpu.matmul %14, %16, %cst_17 {dimension_numbers = #tpu.dot_dimension_numbers<[1], [0], [0], [1], [0, 0, 1, 1], [], []>} : vector<24x128xbf16>, vector<128x128xbf16>, vector<24x128xf32> -> vector<24x128xf32>
    %18 = arith.addf %12, %17 : vector<24x128xf32>
    %c0_18 = arith.constant 0 : index
    %c6 = arith.constant 6 : index
    %c0_19 = arith.constant 0 : index
    %19 = vector.load %arg1[%c0_18, %c6, %c0_19] : memref<1x42x128xbf16, #tpu.memory_space<vmem>>, vector<1x24x128xbf16>
    %20 = vector.shape_cast %19 : vector<1x24x128xbf16> to vector<24x128xbf16>
    %c3 = arith.constant 3 : index
    %c0_20 = arith.constant 0 : index
    %c0_21 = arith.constant 0 : index
    %21 = vector.load %arg2[%c3, %c0_20, %c0_21] : memref<9x128x128xbf16, #tpu.memory_space<vmem>>, vector<1x128x128xbf16>
    %22 = vector.shape_cast %21 : vector<1x128x128xbf16> to vector<128x128xbf16>
    %cst_22 = arith.constant dense<0.000000e+00> : vector<24x128xf32>
    %23 = tpu.matmul %20, %22, %cst_22 {dimension_numbers = #tpu.dot_dimension_numbers<[1], [0], [0], [1], [0, 0, 1, 1], [], []>} : vector<24x128xbf16>, vector<128x128xbf16>, vector<24x128xf32> -> vector<24x128xf32>
    %24 = arith.addf %18, %23 : vector<24x128xf32>
    %c0_23 = arith.constant 0 : index
    %c7 = arith.constant 7 : index
    %c0_24 = arith.constant 0 : index
    %25 = vector.load %arg1[%c0_23, %c7, %c0_24] : memref<1x42x128xbf16, #tpu.memory_space<vmem>>, vector<1x24x128xbf16>
    %26 = vector.shape_cast %25 : vector<1x24x128xbf16> to vector<24x128xbf16>
    %c4 = arith.constant 4 : index
    %c0_25 = arith.constant 0 : index
    %c0_26 = arith.constant 0 : index
    %27 = vector.load %arg2[%c4, %c0_25, %c0_26] : memref<9x128x128xbf16, #tpu.memory_space<vmem>>, vector<1x128x128xbf16>
    %28 = vector.shape_cast %27 : vector<1x128x128xbf16> to vector<128x128xbf16>
    %cst_27 = arith.constant dense<0.000000e+00> : vector<24x128xf32>
    %29 = tpu.matmul %26, %28, %cst_27 {dimension_numbers = #tpu.dot_dimension_numbers<[1], [0], [0], [1], [0, 0, 1, 1], [], []>} : vector<24x128xbf16>, vector<128x128xbf16>, vector<24x128xf32> -> vector<24x128xf32>
    %30 = arith.addf %24, %29 : vector<24x128xf32>
    %c0_28 = arith.constant 0 : index
    %c8 = arith.constant 8 : index
    %c0_29 = arith.constant 0 : index
    %31 = vector.load %arg1[%c0_28, %c8, %c0_29] : memref<1x42x128xbf16, #tpu.memory_space<vmem>>, vector<1x24x128xbf16>
    %32 = vector.shape_cast %31 : vector<1x24x128xbf16> to vector<24x128xbf16>
    %c5 = arith.constant 5 : index
    %c0_30 = arith.constant 0 : index
    %c0_31 = arith.constant 0 : index
    %33 = vector.load %arg2[%c5, %c0_30, %c0_31] : memref<9x128x128xbf16, #tpu.memory_space<vmem>>, vector<1x128x128xbf16>
    %34 = vector.shape_cast %33 : vector<1x128x128xbf16> to vector<128x128xbf16>
    %cst_32 = arith.constant dense<0.000000e+00> : vector<24x128xf32>
    %35 = tpu.matmul %32, %34, %cst_32 {dimension_numbers = #tpu.dot_dimension_numbers<[1], [0], [0], [1], [0, 0, 1, 1], [], []>} : vector<24x128xbf16>, vector<128x128xbf16>, vector<24x128xf32> -> vector<24x128xf32>
    %36 = arith.addf %30, %35 : vector<24x128xf32>
    %c0_33 = arith.constant 0 : index
    %c12 = arith.constant 12 : index
    %c0_34 = arith.constant 0 : index
    %37 = vector.load %arg1[%c0_33, %c12, %c0_34] : memref<1x42x128xbf16, #tpu.memory_space<vmem>>, vector<1x24x128xbf16>
    %38 = vector.shape_cast %37 : vector<1x24x128xbf16> to vector<24x128xbf16>
    %c6_35 = arith.constant 6 : index
    %c0_36 = arith.constant 0 : index
    %c0_37 = arith.constant 0 : index
    %39 = vector.load %arg2[%c6_35, %c0_36, %c0_37] : memref<9x128x128xbf16, #tpu.memory_space<vmem>>, vector<1x128x128xbf16>
    %40 = vector.shape_cast %39 : vector<1x128x128xbf16> to vector<128x128xbf16>
    %cst_38 = arith.constant dense<0.000000e+00> : vector<24x128xf32>
    %41 = tpu.matmul %38, %40, %cst_38 {dimension_numbers = #tpu.dot_dimension_numbers<[1], [0], [0], [1], [0, 0, 1, 1], [], []>} : vector<24x128xbf16>, vector<128x128xbf16>, vector<24x128xf32> -> vector<24x128xf32>
    %42 = arith.addf %36, %41 : vector<24x128xf32>
    %c0_39 = arith.constant 0 : index
    %c13 = arith.constant 13 : index
    %c0_40 = arith.constant 0 : index
    %43 = vector.load %arg1[%c0_39, %c13, %c0_40] : memref<1x42x128xbf16, #tpu.memory_space<vmem>>, vector<1x24x128xbf16>
    %44 = vector.shape_cast %43 : vector<1x24x128xbf16> to vector<24x128xbf16>
    %c7_41 = arith.constant 7 : index
    %c0_42 = arith.constant 0 : index
    %c0_43 = arith.constant 0 : index
    %45 = vector.load %arg2[%c7_41, %c0_42, %c0_43] : memref<9x128x128xbf16, #tpu.memory_space<vmem>>, vector<1x128x128xbf16>
    %46 = vector.shape_cast %45 : vector<1x128x128xbf16> to vector<128x128xbf16>
    %cst_44 = arith.constant dense<0.000000e+00> : vector<24x128xf32>
    %47 = tpu.matmul %44, %46, %cst_44 {dimension_numbers = #tpu.dot_dimension_numbers<[1], [0], [0], [1], [0, 0, 1, 1], [], []>} : vector<24x128xbf16>, vector<128x128xbf16>, vector<24x128xf32> -> vector<24x128xf32>
    %48 = arith.addf %42, %47 : vector<24x128xf32>
    %c0_45 = arith.constant 0 : index
    %c14 = arith.constant 14 : index
    %c0_46 = arith.constant 0 : index
    %49 = vector.load %arg1[%c0_45, %c14, %c0_46] : memref<1x42x128xbf16, #tpu.memory_space<vmem>>, vector<1x24x128xbf16>
    %50 = vector.shape_cast %49 : vector<1x24x128xbf16> to vector<24x128xbf16>
    %c8_47 = arith.constant 8 : index
    %c0_48 = arith.constant 0 : index
    %c0_49 = arith.constant 0 : index
    %51 = vector.load %arg2[%c8_47, %c0_48, %c0_49] : memref<9x128x128xbf16, #tpu.memory_space<vmem>>, vector<1x128x128xbf16>
    %52 = vector.shape_cast %51 : vector<1x128x128xbf16> to vector<128x128xbf16>
    %cst_50 = arith.constant dense<0.000000e+00> : vector<24x128xf32>
    %53 = tpu.matmul %50, %52, %cst_50 {dimension_numbers = #tpu.dot_dimension_numbers<[1], [0], [0], [1], [0, 0, 1, 1], [], []>} : vector<24x128xbf16>, vector<128x128xbf16>, vector<24x128xf32> -> vector<24x128xf32>
    %54 = arith.addf %48, %53 : vector<24x128xf32>
    %c0_51 = arith.constant 0 : index
    %c0_52 = arith.constant 0 : index
    %55 = vector.load %arg3[%c0_51, %c0_52] : memref<1x128xf32, #tpu.memory_space<vmem>>, vector<1x128xf32>
    %56 = vector.broadcast %55 : vector<1x128xf32> to vector<24x128xf32>
    %57 = arith.addf %54, %56 : vector<24x128xf32>
    %c0_53 = arith.constant 0 : index
    %c0_54 = arith.constant 0 : index
    %c0_55 = arith.constant 0 : index
    %58 = vector.load %arg4[%c0_53, %c0_54, %c0_55] : memref<1x24x128xf32, #tpu.memory_space<vmem>>, vector<1x24x128xf32>
    %59 = vector.shape_cast %58 : vector<1x24x128xf32> to vector<24x128xf32>
    %60 = vector.shape_cast %57 : vector<24x128xf32> to vector<1x24x128xf32>
    tpu.vector_store %arg4[%c0_53, %c0_54, %c0_55], %60 {strides = array<i32>} : memref<1x24x128xf32, #tpu.memory_space<vmem>>, vector<1x24x128xf32>,
    return
  }
  func.func @transform_0(%arg0: i32) -> (i32, i32, i32) {
    %c0_i32 = arith.constant 0 : i32
    %c0_i32_0 = arith.constant 0 : i32
    %c0_i32_1 = arith.constant 0 : i32
    return %arg0, %c0_i32, %c0_i32_0 : i32, i32, i32
  }
  func.func @transform_1(%arg0: i32) -> (i32, i32, i32) {
    %c0_i32 = arith.constant 0 : i32
    %c0_i32_0 = arith.constant 0 : i32
    %c0_i32_1 = arith.constant 0 : i32
    %c0_i32_2 = arith.constant 0 : i32
    return %c0_i32, %c0_i32_0, %c0_i32_1 : i32, i32, i32
  }
  func.func @transform_2(%arg0: i32) -> (i32, i32) {
    %c0_i32 = arith.constant 0 : i32
    %c0_i32_0 = arith.constant 0 : i32
    %c0_i32_1 = arith.constant 0 : i32
    return %c0_i32, %c0_i32_0 : i32, i32
  }
  func.func @transform_3(%arg0: i32) -> (i32, i32, i32) {
    %c0_i32 = arith.constant 0 : i32
    %c0_i32_0 = arith.constant 0 : i32
    %c0_i32_1 = arith.constant 0 : i32
    return %arg0, %c0_i32, %c0_i32_0 : i32, i32, i32
  }
}

</mosaic_0001>

<bundles_post_ra>
// kernel: stem_forward.3
= control target key start
LH: loop header
LB: loop body
LE: loop exit
PB: predicated region body
PF: predicated region fallthrough
CT: control target
= control target key end

     0   :  { %vm120_vm0 = vcmask 1041408   ;;  %vm95_vm1 = vcmask 293888   ;;  %s428_s1 = inlined_call_operand.vmem [shape: bf16[36,128], index: 1, kind: input, shape index: {}]   ;;  %s429_s2 = inlined_call_operand.vmem [shape: f32[1,128], index: 2, kind: input, shape index: {}]   ;;  %s430_s0 = inlined_call_operand.vmem [shape: bf16[128,36], index: 0, kind: input, shape index: {}]   ;;  %s431_s3 = inlined_call_operand.vmem [shape: bf16[128,128], index: 3, kind: output, shape index: {}]  }
   0x1   :  { %v35_v0 = vld [vmem:[%s428_s1 + $0x10] sm:$0x3]  ;;  %v282_v4 = vld [vmem:[%s428_s1 + $0x8] sm:$0xff]  ;;  %v281_v5 = vld [vmem:[%s428_s1] sm:$0xff] }
   0x2   :  { %v89_v1 = vunpack.c.l.b16 %v35_v0  ;;  %v273_v6 = vld [vmem:[%s430_s0] sm:$0xff]  ;;  %v275_v7 = vld [vmem:[%s430_s0 + $0x10] sm:$0xff]  ;;  %v274_v10 = vld [vmem:[%s430_s0 + $0x8] sm:$0xff] }
   0x3   :  { %v277_v8 = vld [vmem:[%s430_s0 + $0x20] sm:$0xff]  ;;  %v279_v9 = vld [vmem:[%s430_s0 + $0x30] sm:$0xff]  ;;  %v276_v11 = vld [vmem:[%s430_s0 + $0x18] sm:$0xff] }
   0x4   :  { %v92_v2 = vpack.c.b16 %v89_v1, %v89_v1  ;;  %v278_v12 = vld [vmem:[%s430_s0 + $0x28] sm:$0xff]  ;;  %v280_v13 = vld [vmem:[%s430_s0 + $0x38] sm:$0xff]  ;;  %v339_v16 = vld [vmem:[%s429_s2] ss:$0 sm:$0xff] }
   0x6   :  { %v122_v3 = vsel %vm120_vm0, %v92_v2, 0 }
   0x7   :  { %129 = vmatpush.bf16.msra.mxu0 %v122_v3  ;;  %330 = vmatpush.bf16.msra.mxu1 %v122_v3 }
   0x8   :  { %331 = vmatpush.bf16.msra.mxu2 %v122_v3  ;;  %332 = vmatpush.bf16.msra.mxu3 %v122_v3 }
   0xb   :  { %130 = vmatpush.bf16.msra.mxu0 %v282_v4  ;;  %333 = vmatpush.bf16.msra.mxu1 %v282_v4 }
   0xc   :  { %334 = vmatpush.bf16.msra.mxu2 %v282_v4  ;;  %335 = vmatpush.bf16.msra.mxu3 %v282_v4 }
   0xf   :  { %131 = vmatpush.bf16.msra.mxu0 %v281_v5  ;;  %336 = vmatpush.bf16.msra.mxu1 %v281_v5 }
  0x10   :  { %337 = vmatpush.bf16.msra.mxu2 %v281_v5  ;;  %338 = vmatpush.bf16.msra.mxu3 %v281_v5 }
  0x12   :  { %265 = vmatmul.msk.bf16.vlgmr.msra.gmra.mxu0 %vm95_vm1, %v273_v6  ;;  %267 = vmatmul.msk.bf16.vlgmr.msra.gmra.mxu1 %vm95_vm1, %v275_v7 }
  0x13   :  { %269 = vmatmul.msk.bf16.vlgmr.msra.gmra.mxu2 %vm95_vm1, %v277_v8  ;;  %271 = vmatmul.msk.bf16.vlgmr.msra.gmra.mxu3 %vm95_vm1, %v279_v9 }
  0x22   :  { %266 = vmatmul.msk.bf16.gmra.mxu0 %vm95_vm1, %v274_v10  ;;  %268 = vmatmul.msk.bf16.gmra.mxu1 %vm95_vm1, %v276_v11 }
  0x23   :  { %270 = vmatmul.msk.bf16.gmra.mxu2 %vm95_vm1, %v278_v12  ;;  %272 = vmatmul.msk.bf16.gmra.mxu3 %vm95_vm1, %v280_v13 }
  0x8f   :  { %v133_v14 = vpop.f32.mrf.mxu0  ;;  %v143_v15 = vpop.f32.mrf.mxu1 }
  0x90   :  { %v134_v17 = vadd.f32 %v339_v16, %v133_v14  ;;  %v144_v18 = vadd.f32 %v339_v16, %v143_v15 }
  0x92   :  { %v173_v25 = vmax.f32 %v134_v17, 0.0  ;;  %v177_v26 = vmax.f32 %v144_v18, 0.0 }
  0x96   :  { %v153_v19 = vpop.f32.mrf.mxu2  ;;  %v163_v20 = vpop.f32.mrf.mxu3 }
  0x97   :  { %v135_v21 = vpop.f32.mrf.mxu0  ;;  %v145_v22 = vpop.f32.mrf.mxu1  ;;  %v154_v31 = vadd.f32 %v339_v16, %v153_v19  ;;  %v164_v32 = vadd.f32 %v339_v16, %v163_v20 }
  0x98   :  { %v136_v23 = vadd.f32 %v339_v16, %v135_v21  ;;  %v146_v24 = vadd.f32 %v339_v16, %v145_v22 }
  0x99   :  { %v181_v39 = vmax.f32 %v154_v31, 0.0  ;;  %v185_v40 = vmax.f32 %v164_v32, 0.0 }
  0x9a   :  { %v174_v27 = vmax.f32 %v136_v23, 0.0  ;;  %v178_v28 = vmax.f32 %v146_v24, 0.0 }
  0x9c   :  { %v286_v29 = vpack.c.bf16 %v174_v27, %v173_v25  ;;  %v296_v30 = vpack.c.bf16 %v178_v28, %v177_v26 }
  0x9e   :  { %287 = vst [vmem:[%s431_s3] sm:$0xff] %v286_v29   ;;  %v155_v33 = vpop.f32.mrf.mxu2  ;;  %v165_v34 = vpop.f32.mrf.mxu3 }
  0x9f   :  { %324 = vst [vmem:[%s431_s3 + $0x10] sm:$0xff] %v296_v30   ;;  %v156_v35 = vadd.f32 %v339_v16, %v155_v33  ;;  %v166_v36 = vadd.f32 %v339_v16, %v165_v34  ;;  %v138_v37 = vpop.f32.mrf.mxu0  ;;  %v148_v38 = vpop.f32.mrf.mxu1 }
  0xa0   :  { %v139_v45 = vadd.f32 %v339_v16, %v138_v37  ;;  %v149_v46 = vadd.f32 %v339_v16, %v148_v38 }
  0xa1   :  { %v182_v41 = vmax.f32 %v156_v35, 0.0  ;;  %v186_v42 = vmax.f32 %v166_v36, 0.0 }
  0xa2   :  { %v175_v53 = vmax.f32 %v139_v45, 0.0  ;;  %v179_v54 = vmax.f32 %v149_v46, 0.0 }
  0xa3   :  { %v306_v43 = vpack.c.bf16 %v182_v41, %v181_v39  ;;  %v316_v44 = vpack.c.bf16 %v186_v42, %v185_v40 }
  0xa5   :  { %326 = vst [vmem:[%s431_s3 + $0x20] sm:$0xff] %v306_v43  }
  0xa6   :  { %328 = vst [vmem:[%s431_s3 + $0x30] sm:$0xff] %v316_v44   ;;  %v158_v47 = vpop.f32.mrf.mxu2  ;;  %v168_v48 = vpop.f32.mrf.mxu3 }
  0xa7   :  { %v140_v49 = vpop.f32.mrf.mxu0  ;;  %v150_v50 = vpop.f32.mrf.mxu1  ;;  %v159_v59 = vadd.f32 %v339_v16, %v158_v47  ;;  %v169_v60 = vadd.f32 %v339_v16, %v168_v48 }
  0xa8   :  { %v141_v51 = vadd.f32 %v339_v16, %v140_v49  ;;  %v151_v52 = vadd.f32 %v339_v16, %v150_v50 }
  0xa9   :  { %v183_v1 = vmax.f32 %v159_v59, 0.0  ;;  %v187_v2 = vmax.f32 %v169_v60, 0.0 }
  0xaa   :  { %v176_v55 = vmax.f32 %v141_v51, 0.0  ;;  %v180_v56 = vmax.f32 %v151_v52, 0.0 }
  0xac   :  { %v291_v57 = vpack.c.bf16 %v176_v55, %v175_v53  ;;  %v301_v58 = vpack.c.bf16 %v180_v56, %v179_v54 }
  0xae   :  { %323 = vst [vmem:[%s431_s3 + $0x8] sm:$0xff] %v291_v57   ;;  %v160_v61 = vpop.f32.mrf.mxu2  ;;  %v170_v62 = vpop.f32.mrf.mxu3 }
  0xaf   :  { %325 = vst [vmem:[%s431_s3 + $0x18] sm:$0xff] %v301_v58   ;;  %v161_v63 = vadd.f32 %v339_v16, %v160_v61  ;;  %v171_v0 = vadd.f32 %v339_v16, %v170_v62 }
  0xb1   :  { %v184_v3 = vmax.f32 %v161_v63, 0.0  ;;  %v188_v4 = vmax.f32 %v171_v0, 0.0 }
  0xb3   :  { %v311_v5 = vpack.c.bf16 %v184_v3, %v183_v1  ;;  %v321_v6 = vpack.c.bf16 %v188_v4, %v187_v2 }
  0xb5   :  { %327 = vst [vmem:[%s431_s3 + $0x28] sm:$0xff] %v311_v5  }
  0xb6   :  { %329 = vst [vmem:[%s431_s3 + $0x38] sm:$0xff] %v321_v6  }

// kernel: stem_forward.4
= control target key start
LH: loop header
LB: loop body
LE: loop exit
PB: predicated region body
PF: predicated region fallthrough
CT: control target
= control target key end

     0   :  { %s1716_s1 = inlined_call_operand.vmem [shape: bf16[1152,128], index: 1, kind: input, shape index: {}]   ;;  %s1717_s0 = inlined_call_operand.vmem [shape: bf16[32,1152], index: 0, kind: input, shape index: {}]   ;;  %s1718_s2 = inlined_call_operand.vmem [shape: f32[1,128], index: 2, kind: input, shape index: {}]   ;;  %s1719_s3 = inlined_call_operand.vmem [shape: bf16[32,128], index: 3, kind: output, shape index: {}]  }
   0x1   :  { %v1278_v0 = vld [vmem:[%s1716_s1 + $0x38] sm:$0xff]  ;;  %v1277_v4 = vld [vmem:[%s1716_s1 + $0x30] sm:$0xff]  ;;  %v1276_v8 = vld [vmem:[%s1716_s1 + $0x28] sm:$0xff] }
   0x2   :  { %v1286_v1 = vld [vmem:[%s1716_s1 + $0x78] sm:$0xff]  ;;  %706 = vmatpush.bf16.msra.mxu0 %v1278_v0  ;;  %v1285_v5 = vld [vmem:[%s1716_s1 + $0x70] sm:$0xff]  ;;  %v1284_v9 = vld [vmem:[%s1716_s1 + $0x68] sm:$0xff] }
   0x3   :  { %v1294_v2 = vld [vmem:[%s1716_s1 + $0xb8] sm:$0xff]  ;;  %725 = vmatpush.bf16.msra.mxu1 %v1286_v1  ;;  %v1293_v6 = vld [vmem:[%s1716_s1 + $0xb0] sm:$0xff]  ;;  %v1292_v10 = vld [vmem:[%s1716_s1 + $0xa8] sm:$0xff] }
   0x4   :  { %v1302_v3 = vld [vmem:[%s1716_s1 + $0xf8] sm:$0xff]  ;;  %744 = vmatpush.bf16.msra.mxu2 %v1294_v2  ;;  %v1301_v7 = vld [vmem:[%s1716_s1 + $0xf0] sm:$0xff]  ;;  %v1300_v11 = vld [vmem:[%s1716_s1 + $0xe8] sm:$0xff] }
   0x5   :  { %763 = vmatpush.bf16.msra.mxu3 %v1302_v3  ;;  %v1275_v12 = vld [vmem:[%s1716_s1 + $0x20] sm:$0xff]  ;;  %v1274_v16 = vld [vmem:[%s1716_s1 + $0x18] sm:$0xff]  ;;  %v1273_v20 = vld [vmem:[%s1716_s1 + $0x10] sm:$0xff] }
   0x6   :  { %707 = vmatpush.bf16.msra.mxu0 %v1277_v4  ;;  %v1283_v13 = vld [vmem:[%s1716_s1 + $0x60] sm:$0xff]  ;;  %v1282_v17 = vld [vmem:[%s1716_s1 + $0x58] sm:$0xff]  ;;  %v1281_v21 = vld [vmem:[%s1716_s1 + $0x50] sm:$0xff] }
   0x7   :  { %726 = vmatpush.bf16.msra.mxu1 %v1285_v5  ;;  %v1291_v14 = vld [vmem:[%s1716_s1 + $0xa0] sm:$0xff]  ;;  %v1290_v18 = vld [vmem:[%s1716_s1 + $0x98] sm:$0xff]  ;;  %v1289_v22 = vld [vmem:[%s1716_s1 + $0x90] sm:$0xff] }
   0x8   :  { %745 = vmatpush.bf16.msra.mxu2 %v1293_v6  ;;  %v1299_v15 = vld [vmem:[%s1716_s1 + $0xe0] sm:$0xff]  ;;  %v1298_v19 = vld [vmem:[%s1716_s1 + $0xd8] sm:$0xff]  ;;  %v1297_v23 = vld [vmem:[%s1716_s1 + $0xd0] sm:$0xff] }
   0x9   :  { %764 = vmatpush.bf16.msra.mxu3 %v1301_v7  ;;  %v1272_v24 = vld [vmem:[%s1716_s1 + $0x8] sm:$0xff]  ;;  %v1271_v28 = vld [vmem:[%s1716_s1] sm:$0xff]  ;;  %v905_v39 = vld [vmem:[%s1717_s0 + $0x2c] sm:$0xf0] }
   0xa   :  { %708 = vmatpush.bf16.msra.mxu0 %v1276_v8  ;;  %v1280_v25 = vld [vmem:[%s1716_s1 + $0x48] sm:$0xff]  ;;  %v1279_v29 = vld [vmem:[%s1716_s1 + $0x40] sm:$0xff]  ;;  %v1310_v40 = vld [vmem:[%s1716_s1 + $0x138] sm:$0xff] }
   0xb   :  { %727 = vmatpush.bf16.msra.mxu1 %v1284_v9  ;;  %v1288_v26 = vld [vmem:[%s1716_s1 + $0x88] sm:$0xff]  ;;  %v1287_v30 = vld [vmem:[%s1716_s1 + $0x80] sm:$0xff]  ;;  %v1318_v41 = vld [vmem:[%s1716_s1 + $0x178] sm:$0xff] }
   0xc   :  { %746 = vmatpush.bf16.msra.mxu2 %v1292_v10  ;;  %v1296_v27 = vld [vmem:[%s1716_s1 + $0xc8] sm:$0xff]  ;;  %v1295_v31 = vld [vmem:[%s1716_s1 + $0xc0] sm:$0xff]  ;;  %v1326_v46 = vld [vmem:[%s1716_s1 + $0x1b8] sm:$0xff] }
   0xd   :  { %765 = vmatpush.bf16.msra.mxu3 %v1300_v11  ;;  %v895_v32 = vld [vmem:[%s1717_s0] sm:$0xf]  ;;  %v1257_v33 = vld [vmem:[%s1717_s0 + $0x20] sm:$0xf0]  ;;  %v897_v35 = vld [vmem:[%s1717_s0 + $0x24] sm:$0xf0] }
   0xe   :  { %709 = vmatpush.bf16.msra.mxu0 %v1275_v12  ;;  %v1253_v34 = vld [vmem:[%s1717_s0 + $0x4] sm:$0xf]  ;;  %v903_v36 = vld [vmem:[%s1717_s0 + $0x8] sm:$0xf]  ;;  %v1258_v37 = vld [vmem:[%s1717_s0 + $0x28] sm:$0xf0]  ;;  %v896_v42 = vor.u32 %v1257_v33, %v895_v32 }
   0xf   :  { %728 = vmatpush.bf16.msra.mxu1 %v1283_v13  ;;  %v1254_v38 = vld [vmem:[%s1717_s0 + $0xc] sm:$0xf]  ;;  %v900_v43 = vor.u32 %v1253_v34, %v897_v35  ;;  %v904_v44 = vor.u32 %v1258_v37, %v903_v36  ;;  %v1334_v47 = vld [vmem:[%s1716_s1 + $0x1f8] sm:$0xff]  ;;  %v1309_v48 = vld [vmem:[%s1716_s1 + $0x130] sm:$0xff] }
  0x10   :  { %747 = vmatpush.bf16.msra.mxu2 %v1291_v14  ;;  %v908_v45 = vor.u32 %v1254_v38, %v905_v39  ;;  %v1317_v49 = vld [vmem:[%s1716_s1 + $0x170] sm:$0xff]  ;;  %v1308_v52 = vld [vmem:[%s1716_s1 + $0x128] sm:$0xff]  ;;  %v1307_v56 = vld [vmem:[%s1716_s1 + $0x120] sm:$0xff] }
  0x11   :  { %766 = vmatpush.bf16.msra.mxu3 %v1299_v15  ;;  %v1325_v50 = vld [vmem:[%s1716_s1 + $0x1b0] sm:$0xff]  ;;  %v1316_v53 = vld [vmem:[%s1716_s1 + $0x168] sm:$0xff]  ;;  %v1315_v57 = vld [vmem:[%s1716_s1 + $0x160] sm:$0xff] }
  0x12   :  { %710 = vmatpush.bf16.msra.mxu0 %v1274_v16  ;;  %v1333_v51 = vld [vmem:[%s1716_s1 + $0x1f0] sm:$0xff]  ;;  %v1324_v54 = vld [vmem:[%s1716_s1 + $0x1a8] sm:$0xff]  ;;  %v1323_v58 = vld [vmem:[%s1716_s1 + $0x1a0] sm:$0xff] }
  0x13   :  { %729 = vmatpush.bf16.msra.mxu1 %v1282_v17  ;;  %v1332_v55 = vld [vmem:[%s1716_s1 + $0x1e8] sm:$0xff]  ;;  %v1331_v59 = vld [vmem:[%s1716_s1 + $0x1e0] sm:$0xff]  ;;  %v933_v63 = vld [vmem:[%s1717_s0 + $0x6c] sm:$0xf0] }
  0x14   :  { %748 = vmatpush.bf16.msra.mxu2 %v1290_v18  ;;  %v931_v60 = vld [vmem:[%s1717_s0 + $0x48] sm:$0xf]  ;;  %v1266_v61 = vld [vmem:[%s1717_s0 + $0x68] sm:$0xf0]  ;;  %v939_v0 = vld [vmem:[%s1717_s0 + $0x50] sm:$0xf] }
  0x15   :  { %767 = vmatpush.bf16.msra.mxu3 %v1298_v19  ;;  %v1262_v62 = vld [vmem:[%s1717_s0 + $0x4c] sm:$0xf]  ;;  %v1267_v1 = vld [vmem:[%s1717_s0 + $0x70] sm:$0xf0]  ;;  %v941_v3 = vld [vmem:[%s1717_s0 + $0x74] sm:$0xf0]  ;;  %v932_v6 = vor.u32 %v1266_v61, %v931_v60 }
  0x16   :  { %711 = vmatpush.bf16.msra.mxu0 %v1273_v20  ;;  %v1263_v2 = vld [vmem:[%s1717_s0 + $0x54] sm:$0xf]  ;;  %v1306_v4 = vld [vmem:[%s1716_s1 + $0x118] sm:$0xff]  ;;  %v936_v7 = vor.u32 %v1262_v62, %v933_v63  ;;  %v940_v8 = vor.u32 %v1267_v1, %v939_v0  ;;  %v1304_v16 = vld [vmem:[%s1716_s1 + $0x108] sm:$0xff] }
  0x17   :  { %730 = vmatpush.bf16.msra.mxu1 %v1281_v21  ;;  %v1314_v5 = vld [vmem:[%s1716_s1 + $0x158] sm:$0xff]  ;;  %v944_v9 = vor.u32 %v1263_v2, %v941_v3  ;;  %v1305_v12 = vld [vmem:[%s1716_s1 + $0x110] sm:$0xff]  ;;  %v1312_v17 = vld [vmem:[%s1716_s1 + $0x148] sm:$0xff] }
  0x18   :  { %749 = vmatpush.bf16.msra.mxu2 %v1289_v22  ;;  %v1322_v10 = vld [vmem:[%s1716_s1 + $0x198] sm:$0xff]  ;;  %v1313_v13 = vld [vmem:[%s1716_s1 + $0x150] sm:$0xff]  ;;  %v1320_v18 = vld [vmem:[%s1716_s1 + $0x188] sm:$0xff] }
  0x19   :  { %768 = vmatpush.bf16.msra.mxu3 %v1297_v23  ;;  %v1330_v11 = vld [vmem:[%s1716_s1 + $0x1d8] sm:$0xff]  ;;  %v1321_v14 = vld [vmem:[%s1716_s1 + $0x190] sm:$0xff]  ;;  %v1328_v19 = vld [vmem:[%s1716_s1 + $0x1c8] sm:$0xff] }
  0x1a   :  { %712 = vmatpush.bf16.msra.mxu0 %v1272_v24  ;;  %v1329_v15 = vld [vmem:[%s1716_s1 + $0x1d0] sm:$0xff]  ;;  %v1303_v20 = vld [vmem:[%s1716_s1 + $0x100] sm:$0xff]  ;;  %v1340_v38 = vld [vmem:[%s1716_s1 + $0x228] sm:$0xff] }
  0x1b   :  { %731 = vmatpush.bf16.msra.mxu1 %v1280_v25  ;;  %v1311_v21 = vld [vmem:[%s1716_s1 + $0x140] sm:$0xff]  ;;  %v911_v24 = vld [vmem:[%s1717_s0 + $0x10] sm:$0xf]  ;;  %v1259_v25 = vld [vmem:[%s1717_s0 + $0x30] sm:$0xf0] }
  0x1c   :  { %750 = vmatpush.bf16.msra.mxu2 %v1288_v26  ;;  %v1319_v22 = vld [vmem:[%s1716_s1 + $0x180] sm:$0xff]  ;;  %v1342_v26 = vld [vmem:[%s1716_s1 + $0x238] sm:$0xff]  ;;  %v912_v33 = vor.u32 %v1259_v25, %v911_v24  ;;  %v1341_v37 = vld [vmem:[%s1716_s1 + $0x230] sm:$0xff] }
  0x1d   :  { %769 = vmatpush.bf16.msra.mxu3 %v1296_v27  ;;  %v1327_v23 = vld [vmem:[%s1716_s1 + $0x1c0] sm:$0xff]  ;;  %v1255_v27 = vld [vmem:[%s1717_s0 + $0x14] sm:$0xf] }
  0x1e   :  { %713 = vmatpush.bf16.msra.mxu0 %v1271_v28  ;;  %v913_v28 = vld [vmem:[%s1717_s0 + $0x34] sm:$0xf0]  ;;  %v921_v32 = vld [vmem:[%s1717_s0 + $0x3c] sm:$0xf0] }
  0x1f   :  { %732 = vmatpush.bf16.msra.mxu1 %v1279_v29  ;;  %v919_v29 = vld [vmem:[%s1717_s0 + $0x18] sm:$0xf]  ;;  %v916_v34 = vor.u32 %v1255_v27, %v913_v28  ;;  %v1339_v39 = vld [vmem:[%s1716_s1 + $0x220] sm:$0xff] }
  0x20   :  { %751 = vmatpush.bf16.msra.mxu2 %v1287_v30  ;;  %v1260_v30 = vld [vmem:[%s1717_s0 + $0x38] sm:$0xf0] }
  0x21   :  { %770 = vmatpush.bf16.msra.mxu3 %v1295_v31  ;;  %714 = vmatmul.bf16.vlgmr.msra.gmra.mxu0 %v896_v42  ;;  %v1256_v31 = vld [vmem:[%s1717_s0 + $0x1c] sm:$0xf]  ;;  %v920_v35 = vor.u32 %v1260_v30, %v919_v29 }
  0x22   :  { %782 = vmatpush.bf16.msrb.mxu0 %v1310_v40  ;;  %733 = vmatmul.bf16.vlgmr.msra.gmra.mxu1 %v900_v43  ;;  %v924_v36 = vor.u32 %v1256_v31, %v921_v32  ;;  %v947_v40 = vld [vmem:[%s1717_s0 + $0x58] sm:$0xf]  ;;  %v1264_v42 = vld [vmem:[%s1717_s0 + $0x5c] sm:$0xf]  ;;  %v949_v43 = vld [vmem:[%s1717_s0 + $0x7c] sm:$0xf0] }
  0x23   :  { %801 = vmatpush.bf16.msrb.mxu1 %v1318_v41  ;;  %752 = vmatmul.bf16.vlgmr.msra.gmra.mxu2 %v904_v44  ;;  %v1268_v41 = vld [vmem:[%s1717_s0 + $0x78] sm:$0xf0]  ;;  %v955_v44 = vld [vmem:[%s1717_s0 + $0x60] sm:$0xf] }
  0x24   :  { %771 = vmatmul.bf16.vlgmr.msra.gmra.mxu3 %v908_v45  ;;  %820 = vmatpush.bf16.msrb.mxu2 %v1326_v46  ;;  %v1269_v45 = vld [vmem:[%s1717_s0 + $0x80] sm:$0xf0] }
  0x25   :  { %839 = vmatpush.bf16.msrb.mxu3 %v1334_v47  ;;  %v1265_v46 = vld [vmem:[%s1717_s0 + $0x64] sm:$0xf]  ;;  %v957_v47 = vld [vmem:[%s1717_s0 + $0x84] sm:$0xf0] }
  0x26   :  { %783 = vmatpush.bf16.msrb.mxu0 %v1309_v48  ;;  %v1338_v48 = vld [vmem:[%s1716_s1 + $0x218] sm:$0xff] }
  0x27   :  { %802 = vmatpush.bf16.msrb.mxu1 %v1317_v49  ;;  %v948_v49 = vor.u32 %v1268_v41, %v947_v40 }
  0x28   :  { %821 = vmatpush.bf16.msrb.mxu2 %v1325_v50  ;;  %v952_v50 = vor.u32 %v1264_v42, %v949_v43 }
  0x29   :  { %840 = vmatpush.bf16.msrb.mxu3 %v1333_v51  ;;  %v956_v51 = vor.u32 %v1269_v45, %v955_v44 }
  0x2a   :  { %784 = vmatpush.bf16.msrb.mxu0 %v1308_v52  ;;  %v960_v52 = vor.u32 %v1265_v46, %v957_v47 }
  0x2b   :  { %803 = vmatpush.bf16.msrb.mxu1 %v1316_v53  ;;  %v1337_v53 = vld [vmem:[%s1716_s1 + $0x210] sm:$0xff] }
  0x2c   :  { %822 = vmatpush.bf16.msrb.mxu2 %v1324_v54  ;;  %v1336_v54 = vld [vmem:[%s1716_s1 + $0x208] sm:$0xff] }
  0x2d   :  { %841 = vmatpush.bf16.msrb.mxu3 %v1332_v55  ;;  %v1335_v55 = vld [vmem:[%s1716_s1 + $0x200] sm:$0xff] }
  0x2e   :  { %785 = vmatpush.bf16.msrb.mxu0 %v1307_v56  ;;  %v927_v56 = vld [vmem:[%s1717_s0 + $0x20] sm:$0xf] }
  0x2f   :  { %804 = vmatpush.bf16.msrb.mxu1 %v1315_v57  ;;  %v1261_v57 = vld [vmem:[%s1717_s0 + $0x40] sm:$0xf0] }
  0x30   :  { %823 = vmatpush.bf16.msrb.mxu2 %v1323_v58  ;;  %v963_v58 = vld [vmem:[%s1717_s0 + $0x68] sm:$0xf]  ;;  %v928_v60 = vor.u32 %v1261_v57, %v927_v56 }
  0x31   :  { %842 = vmatpush.bf16.msrb.mxu3 %v1331_v59  ;;  %719 = vmatmul.bf16.gmra.mxu0 %v932_v6  ;;  %v1270_v59 = vld [vmem:[%s1717_s0 + $0x88] sm:$0xf0] }
  0x32   :  { %786 = vmatpush.bf16.msrb.mxu0 %v1306_v4  ;;  %738 = vmatmul.bf16.gmra.mxu1 %v936_v7  ;;  %v964_v61 = vor.u32 %v1270_v59, %v963_v58 }
  0x33   :  { %805 = vmatpush.bf16.msrb.mxu1 %v1314_v5  ;;  %757 = vmatmul.bf16.gmra.mxu2 %v940_v8 }
  0x34   :  { %776 = vmatmul.bf16.gmra.mxu3 %v944_v9  ;;  %824 = vmatpush.bf16.msrb.mxu2 %v1322_v10 }
  0x35   :  { %843 = vmatpush.bf16.msrb.mxu3 %v1330_v11 }
  0x36   :  { %787 = vmatpush.bf16.msrb.mxu0 %v1305_v12 }
  0x37   :  { %806 = vmatpush.bf16.msrb.mxu1 %v1313_v13 }
  0x38   :  { %825 = vmatpush.bf16.msrb.mxu2 %v1321_v14 }
  0x39   :  { %844 = vmatpush.bf16.msrb.mxu3 %v1329_v15 }
  0x3a   :  { %788 = vmatpush.bf16.msrb.mxu0 %v1304_v16 }
  0x3b   :  { %807 = vmatpush.bf16.msrb.mxu1 %v1312_v17 }
  0x3c   :  { %826 = vmatpush.bf16.msrb.mxu2 %v1320_v18 }
  0x3d   :  { %845 = vmatpush.bf16.msrb.mxu3 %v1328_v19 }
  0x3e   :  { %789 = vmatpush.bf16.msrb.mxu0 %v1303_v20  ;;  %v1362_v20 = vld [vmem:[%s1718_s2] ss:$0 sm:$0xff] }
  0x3f   :  { %808 = vmatpush.bf16.msrb.mxu1 %v1311_v21 }
  0x40   :  { %827 = vmatpush.bf16.msrb.mxu2 %v1319_v22 }
  0x41   :  { %846 = vmatpush.bf16.msrb.mxu3 %v1327_v23  ;;  %790 = vmatmul.bf16.vlgmr.msrb.gmra.mxu0 %v912_v33 }
  0x42   :  { %858 = vmatpush.bf16.msra.mxu0 %v1342_v26  ;;  %809 = vmatmul.bf16.vlgmr.msrb.gmra.mxu1 %v916_v34 }
  0x43   :  { %1354 = vmatpush.bf16.msra.mxu1 %v1342_v26  ;;  %828 = vmatmul.bf16.vlgmr.msrb.gmra.mxu2 %v920_v35 }
  0x44   :  { %847 = vmatmul.bf16.vlgmr.msrb.gmra.mxu3 %v924_v36 }
  0x46   :  { %859 = vmatpush.bf16.msra.mxu0 %v1341_v37 }
  0x47   :  { %1355 = vmatpush.bf16.msra.mxu1 %v1341_v37 }
  0x4a   :  { %860 = vmatpush.bf16.msra.mxu0 %v1340_v38 }
  0x4b   :  { %1356 = vmatpush.bf16.msra.mxu1 %v1340_v38 }
  0x4e   :  { %861 = vmatpush.bf16.msra.mxu0 %v1339_v39 }
  0x4f   :  { %1357 = vmatpush.bf16.msra.mxu1 %v1339_v39 }
  0x51   :  { %795 = vmatmul.bf16.gmra.mxu0 %v948_v49 }
  0x52   :  { %862 = vmatpush.bf16.msra.mxu0 %v1338_v48  ;;  %814 = vmatmul.bf16.gmra.mxu1 %v952_v50 }
  0x53   :  { %1358 = vmatpush.bf16.msra.mxu1 %v1338_v48  ;;  %833 = vmatmul.bf16.gmra.mxu2 %v956_v51 }
  0x54   :  { %852 = vmatmul.bf16.gmra.mxu3 %v960_v52 }
  0x56   :  { %863 = vmatpush.bf16.msra.mxu0 %v1337_v53 }
  0x57   :  { %1359 = vmatpush.bf16.msra.mxu1 %v1337_v53 }
  0x5a   :  { %864 = vmatpush.bf16.msra.mxu0 %v1336_v54 }
  0x5b   :  { %1360 = vmatpush.bf16.msra.mxu1 %v1336_v54 }
  0x5e   :  { %865 = vmatpush.bf16.msra.mxu0 %v1335_v55 }
  0x5f   :  { %1361 = vmatpush.bf16.msra.mxu1 %v1335_v55 }
  0x61   :  { %866 = vmatmul.bf16.vlgmr.msra.gmra.mxu0 %v928_v60 }
  0x62   :  { %871 = vmatmul.bf16.vlgmr.msra.gmra.mxu1 %v964_v61 }
  0x9e   :  { %v715_v62 = vpop.f32.mrf.mxu0 }
  0x9f   :  { %v734_v63 = vpop.f32.mrf.mxu1  ;;  %v716_v21 = vadd.f32 %v1362_v20, %v715_v62 }
  0xa1   :  { %v735_v29 = vadd.f32 %v734_v63, %v716_v21 }
  0xa6   :  { %v753_v0 = vpop.f32.mrf.mxu2  ;;  %v717_v2 = vpop.f32.mrf.mxu0 }
  0xa7   :  { %v772_v1 = vpop.f32.mrf.mxu3  ;;  %v736_v3 = vpop.f32.mrf.mxu1  ;;  %v718_v26 = vadd.f32 %v1362_v20, %v717_v2  ;;  %v754_v31 = vadd.f32 %v753_v0, %v735_v29 }
  0xa9   :  { %v737_v32 = vadd.f32 %v736_v3, %v718_v26  ;;  %v773_v40 = vadd.f32 %v772_v1, %v754_v31 }
  0xae   :  { %v755_v4 = vpop.f32.mrf.mxu2  ;;  %v720_v6 = vpop.f32.mrf.mxu0 }
  0xaf   :  { %v774_v5 = vpop.f32.mrf.mxu3  ;;  %v739_v7 = vpop.f32.mrf.mxu1  ;;  %v721_v22 = vadd.f32 %v1362_v20, %v720_v6  ;;  %v756_v35 = vadd.f32 %v755_v4, %v737_v32 }
  0xb1   :  { %v740_v30 = vadd.f32 %v739_v7, %v721_v22  ;;  %v775_v42 = vadd.f32 %v774_v5, %v756_v35 }
  0xb6   :  { %v758_v8 = vpop.f32.mrf.mxu2  ;;  %v722_v10 = vpop.f32.mrf.mxu0 }
  0xb7   :  { %v777_v9 = vpop.f32.mrf.mxu3  ;;  %v741_v11 = vpop.f32.mrf.mxu1  ;;  %v723_v27 = vadd.f32 %v1362_v20, %v722_v10  ;;  %v759_v33 = vadd.f32 %v758_v8, %v740_v30 }
  0xb9   :  { %v742_v34 = vadd.f32 %v741_v11, %v723_v27  ;;  %v778_v41 = vadd.f32 %v777_v9, %v759_v33 }
  0xbe   :  { %v760_v12 = vpop.f32.mrf.mxu2  ;;  %v791_v14 = vpop.f32.mrf.mxu0 }
  0xbf   :  { %v779_v13 = vpop.f32.mrf.mxu3  ;;  %v810_v15 = vpop.f32.mrf.mxu1  ;;  %v761_v36 = vadd.f32 %v760_v12, %v742_v34  ;;  %v792_v44 = vadd.f32 %v791_v14, %v773_v40 }
  0xc1   :  { %v780_v43 = vadd.f32 %v779_v13, %v761_v36  ;;  %v811_v49 = vadd.f32 %v810_v15, %v792_v44 }
  0xc6   :  { %v829_v16 = vpop.f32.mrf.mxu2  ;;  %v793_v18 = vpop.f32.mrf.mxu0 }
  0xc7   :  { %v848_v17 = vpop.f32.mrf.mxu3  ;;  %v812_v19 = vpop.f32.mrf.mxu1  ;;  %v794_v47 = vadd.f32 %v793_v18, %v775_v42  ;;  %v830_v54 = vadd.f32 %v829_v16, %v811_v49 }
  0xc9   :  { %v813_v55 = vadd.f32 %v812_v19, %v794_v47  ;;  %v849_v60 = vadd.f32 %v848_v17, %v830_v54 }
  0xce   :  { %v831_v23 = vpop.f32.mrf.mxu2  ;;  %v796_v24 = vpop.f32.mrf.mxu0 }
  0xcf   :  { %v815_v25 = vpop.f32.mrf.mxu1  ;;  %v850_v28 = vpop.f32.mrf.mxu3  ;;  %v797_v45 = vadd.f32 %v796_v24, %v778_v41  ;;  %v832_v58 = vadd.f32 %v831_v23, %v813_v55 }
  0xd1   :  { %v816_v50 = vadd.f32 %v815_v25, %v797_v45  ;;  %v851_v63 = vadd.f32 %v850_v28, %v832_v58 }
  0xd6   :  { %v834_v37 = vpop.f32.mrf.mxu2  ;;  %v798_v38 = vpop.f32.mrf.mxu0 }
  0xd7   :  { %v817_v39 = vpop.f32.mrf.mxu1  ;;  %v853_v46 = vpop.f32.mrf.mxu3  ;;  %v799_v48 = vadd.f32 %v798_v38, %v780_v43  ;;  %v835_v56 = vadd.f32 %v834_v37, %v816_v50 }
  0xd9   :  { %v818_v57 = vadd.f32 %v817_v39, %v799_v48  ;;  %v854_v61 = vadd.f32 %v853_v46, %v835_v56 }
  0xde   :  { %v836_v51 = vpop.f32.mrf.mxu2  ;;  %v867_v52 = vpop.f32.mrf.mxu0 }
  0xdf   :  { %v872_v53 = vpop.f32.mrf.mxu1  ;;  %v837_v59 = vadd.f32 %v836_v51, %v818_v57  ;;  %v855_v62 = vpop.f32.mrf.mxu3  ;;  %v868_v1 = vadd.f32 %v867_v52, %v849_v60 }
  0xe0   :  { %v873_v2 = vadd.f32 %v872_v53, %v854_v61 }
  0xe1   :  { %v856_v0 = vadd.f32 %v855_v62, %v837_v59  ;;  %v877_v7 = vmax.f32 %v868_v1, 0.0 }
  0xe2   :  { %v879_v8 = vmax.f32 %v873_v2, 0.0 }
  0xe6   :  { %v869_v3 = vpop.f32.mrf.mxu0 }
  0xe7   :  { %v874_v4 = vpop.f32.mrf.mxu1  ;;  %v870_v5 = vadd.f32 %v869_v3, %v851_v63 }
  0xe8   :  { %v875_v6 = vadd.f32 %v874_v4, %v856_v0 }
  0xe9   :  { %v878_v9 = vmax.f32 %v870_v5, 0.0 }
  0xea   :  { %v880_v10 = vmax.f32 %v875_v6, 0.0 }
  0xeb   :  { %v1346_v11 = vpack.c.bf16 %v878_v9, %v877_v7 }
  0xec   :  { %v1351_v12 = vpack.c.bf16 %v880_v10, %v879_v8 }
  0xed   :  { %1347 = vst [vmem:[%s1719_s3] sm:$0xff] %v1346_v11  }
  0xee   :  { %1353 = vst [vmem:[%s1719_s3 + $0x8] sm:$0xff] %v1351_v12  }

// kernel: stem_forward.5
= control target key start
LH: loop header
LB: loop body
LE: loop exit
PB: predicated region body
PF: predicated region fallthrough
CT: control target
= control target key end

     0   :  { %s1695_s12 = smov 0   ;;  %s2025_s0 = inlined_call_operand.vmem [shape: bf16[2,42,128], index: 0, kind: input, shape index: {}]   ;;  %s2026_s1 = inlined_call_operand.vmem [shape: bf16[9,128,128], index: 1, kind: input, shape index: {}]   ;;  %s2027_s2 = inlined_call_operand.vmem [shape: f32[1,128], index: 2, kind: input, shape index: {}]   ;;  %s2028_s3 = inlined_call_operand.vmem [shape: f32[2,24,128], index: 3, kind: output, shape index: {}]  }
   0x1 LB: > { %s1143_s13 = sadd.s32 4294967295, %s1673_s12   ;;  %p1147_p0 = scmp.ge.s32.totalorder %s1673_s12, 1  ;;  %s1673_s12 = sphi %s1695_s12, %s13_s12  }
   0x2   : > { %p137_p1 = scmp.lt.s32.totalorder %s1673_s12, 3 }
   0x4   : > { %p138_p2 = pnand %p1147_p0, %p137_p1 }
   0x5   : > { %p161_p3 = scmp.lt.s32.totalorder (!%p138_p2), %s1143_s13, 1 }
   0x6   : > { %141 = sbr.rel (%p138_p2) target bundleno = 246 (0xf6), region = 32 }
   0xb   : > { %v1583_v0 = vld [vmem:[%s2026_s1 + $0x78] sm:$0xff]  ;;  %v1582_v4 = vld [vmem:[%s2026_s1 + $0x70] sm:$0xff]  ;;  %s2030_s13 = smov (!%p161_p3, %s1143_s13), 1  ;;  %v1581_v8 = vld [vmem:[%s2026_s1 + $0x68] sm:$0xff]  ;;  %vm218_vm0 = vsmask.f32 7424 }
   0xc   : > { %v1575_v1 = vld [vmem:[%s2026_s1 + $0x38] sm:$0xff]  ;;  %284 = vmatpush.bf16.msra.mxu0 %v1583_v0  ;;  %v1574_v5 = vld [vmem:[%s2026_s1 + $0x30] sm:$0xff]  ;;  %s1657_s30 = smul.u32 24, %s2030_s13  ;;  %v1573_v9 = vld [vmem:[%s2026_s1 + $0x28] sm:$0xff]  ;;  %vm392_vm1 = vcmask 1046528   ;;  %vm492_vm2 = vcmask 1044480  }
   0xd   : > { %v1591_v2 = vld [vmem:[%s2026_s1 + $0xb8] sm:$0xff]  ;;  %353 = vmatpush.bf16.msra.mxu1 %v1575_v1  ;;  %v1590_v6 = vld [vmem:[%s2026_s1 + $0xb0] sm:$0xff]  ;;  %v1589_v10 = vld [vmem:[%s2026_s1 + $0xa8] sm:$0xff]  ;;  %vm588_vm3 = vsmask.f32 4352  ;;  %vm798_vm4 = vcmask 1045504  }
   0xe   : > { %v1599_v3 = vld [vmem:[%s2026_s1 + $0xf8] sm:$0xff]  ;;  %446 = vmatpush.bf16.msra.mxu2 %v1591_v2  ;;  %v1598_v7 = vld [vmem:[%s2026_s1 + $0xf0] sm:$0xff]  ;;  %v1597_v11 = vld [vmem:[%s2026_s1 + $0xe8] sm:$0xff]  ;;  %s1747_s16 = scalar_lea.vmem %s2025_s0, %s1657_s30  ;;  %vm894_vm5 = vsmask.f32 5376  ;;  %s170_s25 = scalar_lea.vmem %s2028_s3, %s1657_s30 }
   0xf   : > { %546 = vmatpush.bf16.msra.mxu3 %v1599_v3  ;;  %v1580_v12 = vld [vmem:[%s2026_s1 + $0x60] sm:$0xff]  ;;  %v1762_v16 = vld [vmem:[%s1747_s16 + $0x8] sm:$0xff]   ;;  %v1579_v18 = vld [vmem:[%s2026_s1 + $0x58] sm:$0xff] }
  0x10   : > { %285 = vmatpush.bf16.msra.mxu0 %v1582_v4  ;;  %v1572_v13 = vld [vmem:[%s2026_s1 + $0x20] sm:$0xff]  ;;  %v190_v17 = vld [vmem:[%s1747_s16 + $0xc] sm:$0x1]  ;;  %v1571_v19 = vld [vmem:[%s2026_s1 + $0x18] sm:$0xff]  ;;  %v1772_v20 = vunpack.c.l.b16 %v1762_v16 }
  0x11   : > { %354 = vmatpush.bf16.msra.mxu1 %v1574_v5  ;;  %v1588_v14 = vld [vmem:[%s2026_s1 + $0xa0] sm:$0xff]  ;;  %v215_v21 = vunpack.c.l.b16 %v190_v17  ;;  %v1587_v22 = vld [vmem:[%s2026_s1 + $0x98] sm:$0xff]  ;;  %v468_v27 = vld [vmem:[%s1747_s16 + $0xc] sm:$0x7] }
  0x12   : > { %447 = vmatpush.bf16.msra.mxu2 %v1590_v6  ;;  %v1596_v15 = vld [vmem:[%s2026_s1 + $0xe0] sm:$0xff]  ;;  %v1595_v23 = vld [vmem:[%s2026_s1 + $0xd8] sm:$0xff]  ;;  %v1578_v28 = vld [vmem:[%s2026_s1 + $0x50] sm:$0xff]  ;;  %v489_v37 = vunpack.c.l.b16 %v468_v27  ;;  %v302_v27 = vpack.c.b16 %v1772_v20, %v1772_v20 }
  0x13   : > { %547 = vmatpush.bf16.msra.mxu3 %v1598_v7  ;;  %v1781_v24 = vld [vmem:[%s1747_s16] sm:$0xff]   ;;  %v1570_v29 = vld [vmem:[%s2026_s1 + $0x10] sm:$0xff]  ;;  %v1793_v30 = vpack.c.b16 %v215_v21, %v1772_v20  ;;  %v1577_v38 = vld [vmem:[%s2026_s1 + $0x48] sm:$0xff] }
  0x14   : > { %286 = vmatpush.bf16.msra.mxu0 %v1581_v8  ;;  %v371_v25 = vld [vmem:[%s1747_s16] sm:$0xe]  ;;  %v222_v31 = vshll.u32 %v1781_v24, 16  ;;  %v1586_v32 = vld [vmem:[%s2026_s1 + $0x90] sm:$0xff]  ;;  %v1803_v34 = vunpack.c.h.b16 %v1781_v24  ;;  %v1569_v39 = vld [vmem:[%s2026_s1 + $0x8] sm:$0xff]  ;;  %v220_v40 = vshrl.u32 %v1781_v24, 16  ;;  %v1824_v47 = vpack.c.b16 %v489_v37, %v1772_v20 }
  0x15   : > { %355 = vmatpush.bf16.msra.mxu1 %v1573_v9  ;;  %v467_v26 = vld [vmem:[%s1747_s16] sm:$0x8]  ;;  %v1594_v33 = vld [vmem:[%s2026_s1 + $0xd0] sm:$0xff]  ;;  %v390_v35 = vunpack.c.l.b16 %v371_v25  ;;  %v227_v42 = vshll.u32 %v1793_v30, 16  ;;  %v1585_v43 = vld [vmem:[%s2026_s1 + $0x88] sm:$0xff]  ;;  %v394_v55 = vrot.slane %v1793_v30, 1 }
  0x16   : > { %448 = vmatpush.bf16.msra.mxu2 %v1589_v10  ;;  %v488_v36 = vunpack.c.l.b16 %v467_v26  ;;  %v224_v41 = vrot.slane %v222_v31, 1  ;;  %v1593_v44 = vld [vmem:[%s2026_s1 + $0xc8] sm:$0xff]  ;;  %v1576_v48 = vld [vmem:[%s2026_s1 + $0x40] sm:$0xff]  ;;  %v494_v57 = vrot.slane %v1824_v47, 3  ;;  %v1607_v58 = vld [vmem:[%s2026_s1 + $0x138] sm:$0xff] }
  0x17   : > { %548 = vmatpush.bf16.msra.mxu3 %v1597_v11  ;;  %v391_v45 = vpack.c.b16 %v1803_v34, %v390_v35  ;;  %v1568_v49 = vld [vmem:[%s2026_s1] sm:$0xff]  ;;  %v1832_v51 = vrot.slane %v227_v42, 1  ;;  %v1615_v59 = vld [vmem:[%s2026_s1 + $0x178] sm:$0xff]  ;;  %v1606_v1 = vld [vmem:[%s2026_s1 + $0x130] sm:$0xff] }
  0x18   : > { %287 = vmatpush.bf16.msra.mxu0 %v1580_v12  ;;  %v1821_v46 = vpack.c.b16 %v1803_v34, %v488_v36  ;;  %v225_v50 = vor.u32 %v224_v41, %v220_v40  ;;  %v1584_v52 = vld [vmem:[%s2026_s1 + $0x80] sm:$0xff]  ;;  %v1623_v62 = vld [vmem:[%s2026_s1 + $0x1b8] sm:$0xff]  ;;  %v1614_v2 = vld [vmem:[%s2026_s1 + $0x170] sm:$0xff]  ;;  %v601_v40 = vshll.u32 %v1762_v16, 16 }
  0x19   : > { %356 = vmatpush.bf16.msra.mxu1 %v1572_v13  ;;  %v1592_v53 = vld [vmem:[%s2026_s1 + $0xc0] sm:$0xff]  ;;  %v393_v54 = vrot.slane %v391_v45, 1  ;;  %v1631_v0 = vld [vmem:[%s2026_s1 + $0x1f8] sm:$0xff]  ;;  %v1622_v3 = vld [vmem:[%s2026_s1 + $0x1b0] sm:$0xff] }
  0x1a   : > { %449 = vmatpush.bf16.msra.mxu2 %v1588_v14  ;;  %v493_v56 = vrot.slane %v1821_v46, 3  ;;  %v230_v60 = vsel %vm218_vm0, %v225_v50, %v1832_v51  ;;  %v1630_v4 = vld [vmem:[%s2026_s1 + $0x1f0] sm:$0xff]  ;;  %v1605_v5 = vld [vmem:[%s2026_s1 + $0x128] sm:$0xff]  ;;  %v1604_v9 = vld [vmem:[%s2026_s1 + $0x120] sm:$0xff]  ;;  %v231_v14 = vshrl.u32 %v1793_v30, 16  ;;  %v590_v37 = vshrl.u32 %v1821_v46, 16 }
  0x1b   : > { %549 = vmatpush.bf16.msra.mxu3 %v1596_v15  ;;  %v395_v61 = vsel %vm392_vm1, %v393_v54, %v394_v55  ;;  %v1613_v6 = vld [vmem:[%s2026_s1 + $0x168] sm:$0xff]  ;;  %v1612_v10 = vld [vmem:[%s2026_s1 + $0x160] sm:$0xff]  ;;  %v873_v13 = vld [vmem:[%s1747_s16 + $0x10] sm:$0x7]  ;;  %v586_v15 = vunpack.c.h.b16 %v1762_v16 }
  0x1c   : > { %288 = vmatpush.bf16.msra.mxu0 %v1579_v18  ;;  %v495_v63 = vsel %vm492_vm2, %v493_v56, %v494_v57  ;;  %v1621_v7 = vld [vmem:[%s2026_s1 + $0x1a8] sm:$0xff]  ;;  %v767_v11 = vld [vmem:[%s1747_s16 + $0x4] sm:$0xc]  ;;  %v1611_v25 = vld [vmem:[%s2026_s1 + $0x158] sm:$0xff]  ;;  %v233_v26 = vor.u32 %v231_v14, %v1832_v51 }
  0x1d   : > { %357 = vmatpush.bf16.msra.mxu1 %v1571_v19  ;;  %v1629_v8 = vld [vmem:[%s2026_s1 + $0x1e8] sm:$0xff]  ;;  %v1620_v17 = vld [vmem:[%s2026_s1 + $0x1a0] sm:$0xff]  ;;  %v770_v31 = vld [vmem:[%s1747_s16 + $0x10] sm:$0x3]  ;;  %v695_v14 = vpack.c.b16 %v586_v15, %v586_v15 }
  0x1e   : > { %450 = vmatpush.bf16.msra.mxu2 %v1587_v22  ;;  %v1895_v12 = vld [vmem:[%s1747_s16 + $0x8] sm:$0xff]   ;;  %v1628_v18 = vld [vmem:[%s2026_s1 + $0x1e0] sm:$0xff]  ;;  %v792_v22 = vunpack.c.l.b16 %v767_v11  ;;  %v1602_v35 = vld [vmem:[%s2026_s1 + $0x110] sm:$0xff]  ;;  %v795_v41 = vunpack.c.l.b16 %v770_v31 }
  0x1f   : > { %550 = vmatpush.bf16.msra.mxu3 %v1595_v23  ;;  %v1646_v19 = vunpack.c.l.b16 %v1895_v12  ;;  %v1647_v21 = vunpack.c.h.b16 %v1895_v12  ;;  %v892_v23 = vunpack.c.l.b16 %v873_v13  ;;  %v1610_v36 = vld [vmem:[%s2026_s1 + $0x150] sm:$0xff]  ;;  %v1601_v47 = vld [vmem:[%s2026_s1 + $0x108] sm:$0xff]  ;;  %v1635_v13 = vld [vmem:[%s2026_s1 + $0x218] sm:$0xff] }
  0x20   : > { %289 = vmatpush.bf16.msra.mxu0 %v1578_v28  ;;  %v1619_v28 = vld [vmem:[%s2026_s1 + $0x198] sm:$0xff]  ;;  %v1618_v42 = vld [vmem:[%s2026_s1 + $0x190] sm:$0xff]  ;;  %v1617_v54 = vld [vmem:[%s2026_s1 + $0x188] sm:$0xff] }
  0x21   : > { %358 = vmatpush.bf16.msra.mxu1 %v1570_v29  ;;  %v1627_v29 = vld [vmem:[%s2026_s1 + $0x1d8] sm:$0xff]  ;;  %v1626_v30 = vld [vmem:[%s2026_s1 + $0x1d0] sm:$0xff] }
  0x22   : > { %451 = vmatpush.bf16.msra.mxu2 %v1586_v32  ;;  %v1926_v32 = vpack.c.b16 %v1646_v19, %v792_v22  ;;  %v1638_v11 = vld [vmem:[%s2026_s1 + $0x230] sm:$0xff]  ;;  %v1632_v22 = vld [vmem:[%s2026_s1 + $0x200] sm:$0xff] }
  0x23   : > { %551 = vmatpush.bf16.msra.mxu3 %v1594_v33  ;;  %v1928_v33 = vpack.c.b16 %v892_v23, %v1647_v21 }
  0x24   : > { %290 = vmatpush.bf16.msra.mxu0 %v1577_v38  ;;  %v593_v38 = vshll.u32 %v1821_v46, 16 }
  0x25   : > { %359 = vmatpush.bf16.msra.mxu1 %v1569_v39  ;;  %v598_v39 = vshrl.u32 %v1762_v16, 16  ;;  %v904_v45 = vshrl.u32 %v1928_v33, 16  ;;  %v907_v46 = vshll.u32 %v1928_v33, 16  ;;  %v1633_v16 = vld [vmem:[%s2026_s1 + $0x208] sm:$0xff] }
  0x26   : > { %452 = vmatpush.bf16.msra.mxu2 %v1585_v43  ;;  %v896_v43 = vshrl.u32 %v1926_v32, 16  ;;  %v595_v50 = vrot.slane %v593_v38, 4 }
  0x27   : > { %552 = vmatpush.bf16.msra.mxu3 %v1593_v44  ;;  %v899_v44 = vshll.u32 %v1926_v32, 16  ;;  %v600_v51 = vrot.slane %v598_v39, 3 }
  0x28   : > { %291 = vmatpush.bf16.msra.mxu0 %v1576_v48  ;;  %v1609_v48 = vld [vmem:[%s2026_s1 + $0x148] sm:$0xff]  ;;  %v898_v56 = vrot.slane %v896_v43, 2 }
  0x29   : > { %360 = vmatpush.bf16.msra.mxu1 %v1568_v49  ;;  %v592_v49 = vrot.slane %v590_v37, 3 }
  0x2a   : > { %453 = vmatpush.bf16.msra.mxu2 %v1584_v52  ;;  %v603_v52 = vrot.slane %v601_v40, 4 }
  0x2b   : > { %553 = vmatpush.bf16.msra.mxu3 %v1592_v53  ;;  %292 = vmatmul.bf16.vlgmr.msra.gmra.mxu0 %v230_v60  ;;  %v797_v53 = vpack.c.b16 %v795_v41, %v1647_v21  ;;  %v1600_v60 = vld [vmem:[%s2026_s1 + $0x100] sm:$0xff] }
  0x2c   : > { %656 = vmatpush.bf16.msrb.mxu0 %v1607_v58  ;;  %361 = vmatmul.bf16.vlgmr.msra.gmra.mxu1 %v1781_v24  ;;  %v1603_v24 = vld [vmem:[%s2026_s1 + $0x118] sm:$0xff]  ;;  %v906_v58 = vrot.slane %v904_v45, 2 }
  0x2d   : > { %746 = vmatpush.bf16.msrb.mxu1 %v1615_v59  ;;  %454 = vmatmul.bf16.vlgmr.msra.gmra.mxu2 %v395_v61  ;;  %v909_v59 = vrot.slane %v907_v46, 3  ;;  %v1608_v61 = vld [vmem:[%s2026_s1 + $0x140] sm:$0xff] }
  0x2e   : > { %554 = vmatmul.bf16.vlgmr.msra.gmra.mxu3 %v495_v63  ;;  %852 = vmatpush.bf16.msrb.mxu2 %v1623_v62  ;;  %v1639_v62 = vld [vmem:[%s2026_s1 + $0x238] sm:$0xff]  ;;  %v596_v63 = vor.u32 %v595_v50, %v592_v49 }
  0x2f   : > { %962 = vmatpush.bf16.msrb.mxu3 %v1631_v0  ;;  %v604_v0 = vor.u32 %v603_v52, %v600_v51 }
  0x30   : > { %657 = vmatpush.bf16.msrb.mxu0 %v1606_v1  ;;  %v1616_v1 = vld [vmem:[%s2026_s1 + $0x180] sm:$0xff] }
  0x31   : > { %747 = vmatpush.bf16.msrb.mxu1 %v1614_v2  ;;  %v1624_v2 = vld [vmem:[%s2026_s1 + $0x1c0] sm:$0xff] }
  0x32   : > { %853 = vmatpush.bf16.msrb.mxu2 %v1622_v3  ;;  %v799_v3 = vrot.slane %v1926_v32, 2 }
  0x33   : > { %963 = vmatpush.bf16.msrb.mxu3 %v1630_v4  ;;  %v800_v4 = vrot.slane %v797_v53, 2 }
  0x34   : > { %658 = vmatpush.bf16.msrb.mxu0 %v1605_v5 }
  0x35   : > { %748 = vmatpush.bf16.msrb.mxu1 %v1613_v6  ;;  %v910_v6 = vor.u32 %v909_v59, %v906_v58 }
  0x36   : > { %854 = vmatpush.bf16.msrb.mxu2 %v1621_v7  ;;  %v694_v7 = vpack.c.b16 %v1772_v20, %v1803_v34  ;;  %v1637_v20 = vld [vmem:[%s2026_s1 + $0x228] sm:$0xff]  ;;  %v1636_v34 = vld [vmem:[%s2026_s1 + $0x220] sm:$0xff] }
  0x37   : > { %964 = vmatpush.bf16.msrb.mxu3 %v1629_v8  ;;  %v605_v8 = vsel %vm588_vm3, %v596_v63, %v604_v0 }
  0x38   : > { %659 = vmatpush.bf16.msrb.mxu0 %v1604_v9  ;;  %v801_v9 = vsel %vm798_vm4, %v799_v3, %v800_v4 }
  0x39   : > { %749 = vmatpush.bf16.msrb.mxu1 %v1612_v10 }
  0x3a   : > { %855 = vmatpush.bf16.msrb.mxu2 %v1620_v17  ;;  %v1634_v17 = vld [vmem:[%s2026_s1 + $0x210] sm:$0xff] }
  0x3b   : > { %965 = vmatpush.bf16.msrb.mxu3 %v1628_v18  ;;  %297 = vmatmul.bf16.gmra.mxu0 %v233_v26  ;;  %v983_v18 = vld [vmem:[%s1747_s16 + $0x4] sm:$0x8] }
  0x3c   : > { %660 = vmatpush.bf16.msrb.mxu0 %v1603_v24  ;;  %366 = vmatmul.bf16.gmra.mxu1 %v302_v27  ;;  %v1002_v21 = vunpack.c.l.b16 %v983_v18  ;;  %v1005_v24 = vrot.slane %v1928_v33, 3 }
  0x3d   : > { %750 = vmatpush.bf16.msrb.mxu1 %v1611_v25  ;;  %459 = vmatmul.bf16.gmra.mxu2 %v394_v55  ;;  %v1625_v55 = vld [vmem:[%s2026_s1 + $0x1c8] sm:$0xff] }
  0x3e   : > { %559 = vmatmul.bf16.gmra.mxu3 %v494_v57  ;;  %856 = vmatpush.bf16.msrb.mxu2 %v1619_v28  ;;  %v901_v57 = vrot.slane %v899_v44, 3  ;;  %v1003_v15 = vpack.c.b16 %v1646_v19, %v1002_v21 }
  0x3f   : > { %966 = vmatpush.bf16.msrb.mxu3 %v1627_v29 }
  0x40   : > { %661 = vmatpush.bf16.msrb.mxu0 %v1602_v35  ;;  %v902_v5 = vor.u32 %v901_v57, %v898_v56  ;;  %v1004_v23 = vrot.slane %v1003_v15, 3 }
  0x41   : > { %751 = vmatpush.bf16.msrb.mxu1 %v1610_v36 }
  0x42   : > { %857 = vmatpush.bf16.msrb.mxu2 %v1618_v42  ;;  %v911_v10 = vsel %vm894_vm5, %v902_v5, %v910_v6  ;;  %v1006_v25 = vsel %vm492_vm2, %v1004_v23, %v1005_v24 }
  0x43   : > { %967 = vmatpush.bf16.msrb.mxu3 %v1626_v30 }
  0x44   : > { %662 = vmatpush.bf16.msrb.mxu0 %v1601_v47 }
  0x45   : > { %752 = vmatpush.bf16.msrb.mxu1 %v1609_v48 }
  0x46   : > { %858 = vmatpush.bf16.msrb.mxu2 %v1617_v54 }
  0x47   : > { %968 = vmatpush.bf16.msrb.mxu3 %v1625_v55 }
  0x48   : > { %663 = vmatpush.bf16.msrb.mxu0 %v1600_v60 }
  0x49   : > { %753 = vmatpush.bf16.msrb.mxu1 %v1608_v61 }
  0x4a   : > { %859 = vmatpush.bf16.msrb.mxu2 %v1616_v1 }
  0x4b   : > { %969 = vmatpush.bf16.msrb.mxu3 %v1624_v2  ;;  %664 = vmatmul.bf16.vlgmr.msrb.gmra.mxu0 %v605_v8 }
  0x4c   : > { %1057 = vmatpush.bf16.msra.mxu0 %v1639_v62  ;;  %754 = vmatmul.bf16.vlgmr.msrb.gmra.mxu1 %v694_v7 }
  0x4d   : > { %1649 = vmatpush.bf16.msra.mxu1 %v1639_v62  ;;  %860 = vmatmul.bf16.vlgmr.msrb.gmra.mxu2 %v801_v9  ;;  %v1666_v9 = vld [vmem:[%s2027_s2] ss:$0 sm:$0xff] }
  0x4e   : > { %970 = vmatmul.bf16.vlgmr.msrb.gmra.mxu3 %v911_v10 }
  0x50   : > { %1058 = vmatpush.bf16.msra.mxu0 %v1638_v11 }
  0x51   : > { %1650 = vmatpush.bf16.msra.mxu1 %v1638_v11 }
  0x54   : > { %1059 = vmatpush.bf16.msra.mxu0 %v1637_v20 }
  0x55   : > { %1651 = vmatpush.bf16.msra.mxu1 %v1637_v20 }
  0x58   : > { %1060 = vmatpush.bf16.msra.mxu0 %v1636_v34 }
  0x59   : > { %1652 = vmatpush.bf16.msra.mxu1 %v1636_v34 }
  0x5b   : > { %669 = vmatmul.bf16.gmra.mxu0 %v604_v0 }
  0x5c   : > { %1061 = vmatpush.bf16.msra.mxu0 %v1635_v13  ;;  %759 = vmatmul.bf16.gmra.mxu1 %v695_v14 }
  0x5d   : > { %1653 = vmatpush.bf16.msra.mxu1 %v1635_v13  ;;  %865 = vmatmul.bf16.gmra.mxu2 %v800_v4 }
  0x5e   : > { %975 = vmatmul.bf16.gmra.mxu3 %v910_v6 }
  0x60   : > { %1062 = vmatpush.bf16.msra.mxu0 %v1634_v17 }
  0x61   : > { %1654 = vmatpush.bf16.msra.mxu1 %v1634_v17 }
  0x64   : > { %1063 = vmatpush.bf16.msra.mxu0 %v1633_v16 }
  0x65   : > { %1655 = vmatpush.bf16.msra.mxu1 %v1633_v16 }
  0x68   : > { %1064 = vmatpush.bf16.msra.mxu0 %v1632_v22 }
  0x69   : > { %1656 = vmatpush.bf16.msra.mxu1 %v1632_v22 }
  0x6b   : > { %1065 = vmatmul.bf16.vlgmr.msra.gmra.mxu0 %v1006_v25 }
  0x6c   : > { %1070 = vmatmul.bf16.vlgmr.msra.gmra.mxu1 %v1005_v24 }
  0xa8   : > { %v293_v26 = vpop.f32.mrf.mxu0 }
  0xa9   : > { %v362_v27 = vpop.f32.mrf.mxu1 }
  0xaa   : > { %v363_v47 = vadd.f32 %v362_v27, %v293_v26 }
  0xb0   : > { %v455_v28 = vpop.f32.mrf.mxu2  ;;  %v295_v19 = vpop.f32.mrf.mxu0 }
  0xb1   : > { %v555_v12 = vpop.f32.mrf.mxu3  ;;  %v364_v29 = vpop.f32.mrf.mxu1  ;;  %v464_v49 = vadd.f32 %v455_v28, %v363_v47 }
  0xb2   : > { %v365_v57 = vadd.f32 %v364_v29, %v295_v19 }
  0xb3   : > { %v564_v55 = vadd.f32 %v555_v12, %v464_v49 }
  0xb8   : > { %v457_v31 = vpop.f32.mrf.mxu2  ;;  %v298_v35 = vpop.f32.mrf.mxu0 }
  0xb9   : > { %v557_v32 = vpop.f32.mrf.mxu3  ;;  %v367_v36 = vpop.f32.mrf.mxu1  ;;  %v465_v60 = vadd.f32 %v457_v31, %v365_v57 }
  0xba   : > { %v368_v48 = vadd.f32 %v367_v36, %v298_v35 }
  0xbb   : > { %v565_v3 = vadd.f32 %v557_v32, %v465_v60 }
  0xc0   : > { %v460_v37 = vpop.f32.mrf.mxu2  ;;  %v300_v39 = vpop.f32.mrf.mxu0 }
  0xc1   : > { %v560_v38 = vpop.f32.mrf.mxu3  ;;  %v369_v33 = vpop.f32.mrf.mxu1  ;;  %v466_v50 = vadd.f32 %v460_v37, %v368_v48 }
  0xc3   : > { %v566_v56 = vadd.f32 %v560_v38, %v466_v50 }
  0xc8   : > { %v462_v40 = vpop.f32.mrf.mxu2  ;;  %v665_v42 = vpop.f32.mrf.mxu0 }
  0xc9   : > { %v562_v41 = vpop.f32.mrf.mxu3  ;;  %v755_v30 = vpop.f32.mrf.mxu1  ;;  %v674_v58 = vadd.f32 %v665_v42, %v564_v55 }
  0xcb   : > { %v764_v1 = vadd.f32 %v755_v30, %v674_v58 }
  0xd0   : > { %v861_v43 = vpop.f32.mrf.mxu2  ;;  %v667_v45 = vpop.f32.mrf.mxu0 }
  0xd1   : > { %v971_v44 = vpop.f32.mrf.mxu3  ;;  %v757_v46 = vpop.f32.mrf.mxu1  ;;  %v870_v4 = vadd.f32 %v861_v43, %v764_v1  ;;  %v675_v6 = vadd.f32 %v667_v45, %v565_v3 }
  0xd3   : > { %v980_v7 = vadd.f32 %v971_v44, %v870_v4  ;;  %v765_v13 = vadd.f32 %v757_v46, %v675_v6 }
  0xd8   : > { %v863_v51 = vpop.f32.mrf.mxu2  ;;  %v670_v53 = vpop.f32.mrf.mxu0 }
  0xd9   : > { %v973_v52 = vpop.f32.mrf.mxu3  ;;  %v760_v54 = vpop.f32.mrf.mxu1  ;;  %v676_v59 = vadd.f32 %v670_v53, %v566_v56  ;;  %v871_v18 = vadd.f32 %v863_v51, %v765_v13 }
  0xdb   : > { %v766_v2 = vadd.f32 %v760_v54, %v676_v59  ;;  %v981_v15 = vadd.f32 %v973_v52, %v871_v18 }
  0xe0   : > { %v866_v61 = vpop.f32.mrf.mxu2  ;;  %v672_v63 = vpop.f32.mrf.mxu0 }
  0xe1   : > { %v976_v62 = vpop.f32.mrf.mxu3  ;;  %v762_v0 = vpop.f32.mrf.mxu1  ;;  %v872_v5 = vadd.f32 %v866_v61, %v766_v2 }
  0xe3   : > { %v982_v8 = vadd.f32 %v976_v62, %v872_v5 }
  0xe8   : > { %v868_v10 = vpop.f32.mrf.mxu2  ;;  %v1066_v20 = vpop.f32.mrf.mxu0 }
  0xe9   : > { %v978_v11 = vpop.f32.mrf.mxu3  ;;  %v1071_v34 = vpop.f32.mrf.mxu1  ;;  %v1075_v14 = vadd.f32 %v1066_v20, %v980_v7 }
  0xea   : > { %v1077_v17 = vadd.f32 %v1071_v34, %v982_v8 }
  0xeb   : > { %v1082_v21 = vadd.f32 %v1666_v9, %v1075_v14 }
  0xec   : > { %v1084_v16 = vadd.f32 %v1666_v9, %v1077_v17 }
  0xed   : > { %1085 = vst [vmem:[%s170_s25] sm:$0xff] %v1082_v21 }
  0xee   : > { %1087 = vst [vmem:[%s170_s25 + $0x10] sm:$0xff] %v1084_v16 }
  0xf0   : > { %v1068_v22 = vpop.f32.mrf.mxu0 }
  0xf1   : > { %v1073_v23 = vpop.f32.mrf.mxu1  ;;  %v1076_v24 = vadd.f32 %v1068_v22, %v981_v15 }
  0xf3   : > { %v1083_v25 = vadd.f32 %v1666_v9, %v1076_v24 }
  0xf5   : > { %1086 = vst [vmem:[%s170_s25 + $0x8] sm:$0xff] %v1083_v25 }
  0xf6 PF: > { %s13_s12 = sadd.s32 1, %s1673_s12  }
  0xf7   : > { %p10_p4 = scmp.ge.s32.totalorder %s13_s12, 4  }
  0xf9   :  { %12 = sbr.rel (!%p10_p4) target bundleno = 1 (0x1), region = 70 }

</bundles_post_ra>
